<compile_context>
chip_gen: v5e
topology: v5e:2x2
jax: 0.10.0
libtpu: 0.0.40
codegen_flags: <defaults>
</compile_context>

<pallas_src>
import jax
import jax.numpy as jnp
from jax import lax
from jax.experimental import pallas as pl
from jax.experimental.pallas import tpu as pltpu

# ---- model hyperparameters (from the PyTorch module) ----
N_EMBD = 64
BLOCK_SIZE = 64
N_LAYERS = 6
N_HEADS = 4
HEAD_SIZE = N_EMBD // N_HEADS
VOCAB = 65                 # len(chars) for tiny-shakespeare style corpus
VOCAB_PAD = 128            # lane-dense padded vocab for the LM head
FF_DIM = 4 * N_EMBD
LN_EPS = 1e-5
NEG_BIG = -1e9


def _layernorm(x, g, b):
    mu = jnp.mean(x, axis=-1, keepdims=True)
    var = jnp.mean((x - mu) ** 2, axis=-1, keepdims=True)
    return (x - mu) * lax.rsqrt(var + LN_EPS) * g + b


def transformer_kernel(x_ref,
                       ln1_g_ref, ln1_b_ref,
                       wqkv_ref, wproj_ref, bproj_ref,
                       ln2_g_ref, ln2_b_ref,
                       w1_ref, b1_ref, w2_ref, b2_ref,
                       lnf_g_ref, lnf_b_ref,
                       whead_ref, bhead_ref,
                       out_ref):
    """One grid program processes one batch sequence end-to-end."""
    x0 = x_ref[0].astype(jnp.float32)                      # (T, C), f32 residual
    T, C = x0.shape
    scale = HEAD_SIZE ** -0.5

    # causal additive bias, built ONCE per program (not per layer / per head)
    rows = lax.broadcasted_iota(jnp.int32, (T, T), 0)
    cols = lax.broadcasted_iota(jnp.int32, (T, T), 1)
    neg_mask = jnp.where(cols <= rows, 0.0, NEG_BIG).astype(jnp.float32)

    def layer_body(l, x):
        # ------------- multi-head causal self-attention (pre-LN) -------------
        xn = _layernorm(x, ln1_g_ref[l], ln1_b_ref[l]).astype(jnp.bfloat16)
        qkv = jnp.dot(xn, wqkv_ref[l],
                      preferred_element_type=jnp.float32)          # (T, 3C)
        q = qkv[:, 0 * C:1 * C].astype(jnp.bfloat16)
        k = qkv[:, 1 * C:2 * C].astype(jnp.bfloat16)
        v = qkv[:, 2 * C:3 * C].astype(jnp.bfloat16)

        heads = []
        for h in range(N_HEADS):                    # static unrolled head loop
            sl = slice(h * HEAD_SIZE, (h + 1) * HEAD_SIZE)
            qh, kh, vh = q[:, sl], k[:, sl], v[:, sl]
            wei = jnp.einsum('td,sd->ts', qh, kh,
                             preferred_element_type=jnp.float32) * scale
            wei = wei + neg_mask
            wei = wei - jnp.max(wei, axis=-1, keepdims=True)
            p = jnp.exp(wei)
            p = p * pl.reciprocal(jnp.sum(p, axis=-1, keepdims=True),
                                  approx=True)
            oh = jnp.dot(p.astype(jnp.bfloat16), vh,
                         preferred_element_type=jnp.float32)        # (T, D)
            heads.append(oh)
        attn = jnp.concatenate(heads, axis=-1)                      # (T, C)

        proj = jnp.dot(attn.astype(jnp.bfloat16), wproj_ref[l],
                       preferred_element_type=jnp.float32) + bproj_ref[l]
        x = x + proj                           # residual (dropout = identity)

        # ----------------------- feed-forward (pre-LN) -----------------------
        xn2 = _layernorm(x, ln2_g_ref[l], ln2_b_ref[l]).astype(jnp.bfloat16)
        h1 = jnp.dot(xn2, w1_ref[l],
                     preferred_element_type=jnp.float32) + b1_ref[l]
        h1 = jnp.maximum(h1, 0.0).astype(jnp.bfloat16)
        ff = jnp.dot(h1, w2_ref[l],
                     preferred_element_type=jnp.float32) + b2_ref[l]
        return x + ff                          # residual (dropout = identity)

    x = lax.fori_loop(0, N_LAYERS, layer_body, x0)

    # -------------- final LayerNorm + (vocab-padded) LM head -----------------
    xf = _layernorm(x, lnf_g_ref[...], lnf_b_ref[...]).astype(jnp.bfloat16)
    logits = jnp.dot(xf, whead_ref[...],
                     preferred_element_type=jnp.float32) + bhead_ref[...]
    out_ref[0] = logits.astype(out_ref.dtype)


def transformer_lm_forward(idx, params):
    """idx: int32 (B, T). Returns (logits of shape (B*T, VOCAB), None)."""
    B, T = idx.shape
    C, V, F, L = N_EMBD, VOCAB, FF_DIM, N_LAYERS

    # TODO(synk): embedding lookups (gather) stay in plain JAX glue.
    tok = jnp.take(params['tok_emb'], idx, axis=0)           # (B, T, C)
    pos = params['pos_emb'][:T][None, :, :]                  # (1, T, C)
    x = (tok + pos).astype(jnp.float32)                      # (B, T, C)

    # fused QKV weights + bf16 weight casts (residual stream stays f32)
    wqkv = jnp.concatenate([params['wq'], params['wk'], params['wv']],
                           axis=-1).astype(jnp.bfloat16)     # (L, C, 3C)
    wproj = params['wproj'].astype(jnp.bfloat16)
    w1 = params['w1'].astype(jnp.bfloat16)
    w2 = params['w2'].astype(jnp.bfloat16)
    whead = jnp.zeros((C, VOCAB_PAD), jnp.float32).at[:, :V].set(
        params['whead']).astype(jnp.bfloat16)                # (C, 128)
    bhead = jnp.zeros((1, VOCAB_PAD), jnp.float32).at[:, :V].set(
        params['bhead'])                                     # (1, 128)

    full3 = lambda shp: pl.BlockSpec(shp, lambda b: (0, 0, 0))
    full2 = lambda shp: pl.BlockSpec(shp, lambda b: (0, 0))

    in_specs = [
        pl.BlockSpec((1, T, C), lambda b: (b, 0, 0)),        # x (one sequence)
        full3((L, 1, C)), full3((L, 1, C)),                  # ln1 g, b
        full3((L, C, 3 * C)),                                # W_qkv (bf16)
        full3((L, C, C)),                                    # W_proj (bf16)
        full3((L, 1, C)),                                    # b_proj
        full3((L, 1, C)), full3((L, 1, C)),                  # ln2 g, b
        full3((L, C, F)), full3((L, 1, F)),                  # W1 (bf16), b1
        full3((L, F, C)), full3((L, 1, C)),                  # W2 (bf16), b2
        full2((1, C)), full2((1, C)),                        # lnf g, b
        full2((C, VOCAB_PAD)), full2((1, VOCAB_PAD)),        # W_head, b_head
    ]

    padded = pl.pallas_call(
        transformer_kernel,
        out_shape=jax.ShapeDtypeStruct((B, T, VOCAB_PAD), jnp.float32),
        grid_spec=pltpu.PrefetchScalarGridSpec(
            num_scalar_prefetch=0,
            grid=(B,),
            in_specs=in_specs,
            out_specs=pl.BlockSpec((1, T, VOCAB_PAD), lambda b: (b, 0, 0)),
        ),
        compiler_params=pltpu.CompilerParams(
            dimension_semantics=("parallel",),
            vmem_limit_bytes=16 * 1024 * 1024),
    )(x,
      params['ln1_g'], params['ln1_b'],
      wqkv, wproj, params['bproj'],
      params['ln2_g'], params['ln2_b'],
      w1, params['b1'], w2, params['b2'],
      params['lnf_g'], params['lnf_b'],
      whead, bhead)

    logits = padded[:, :, :V].reshape(B * T, V)
    return logits, None          # TODO(synk): cross-entropy loss not needed (targets=None)


# ------------------------ pure-JAX reference (f32, for sanity check) ---------
def reference_forward(idx, params):
    B, T = idx.shape
    tok = jnp.take(params['tok_emb'], idx, axis=0)
    pos = params['pos_emb'][:T][None, :, :]
    x = (tok + pos).astype(jnp.float32)
    causal = jnp.tril(jnp.ones((T, T), bool))
    for l in range(N_LAYERS):
        xn = _layernorm(x, params['ln1_g'][l, 0], params['ln1_b'][l, 0])
        q = xn @ params['wq'][l]
        k = xn @ params['wk'][l]
        v = xn @ params['wv'][l]
        q = q.reshape(B, T, N_HEADS, HEAD_SIZE)
        k = k.reshape(B, T, N_HEADS, HEAD_SIZE)
        v = v.reshape(B, T, N_HEADS, HEAD_SIZE)
        wei = jnp.einsum('bthd,bshd->bhts', q, k) * HEAD_SIZE ** -0.5
        wei = jnp.where(causal[None, None], wei, -jnp.inf)
        p = jax.nn.softmax(wei, axis=-1)
        o = jnp.einsum('bhts,bshd->bthd', p, v).reshape(B, T, N_EMBD)
        x = x + o @ params['wproj'][l] + params['bproj'][l, 0]
        xn2 = _layernorm(x, params['ln2_g'][l, 0], params['ln2_b'][l, 0])
        h = jax.nn.relu(xn2 @ params['w1'][l] + params['b1'][l, 0])
        x = x + h @ params['w2'][l] + params['b2'][l, 0]
    xf = _layernorm(x, params['lnf_g'][0], params['lnf_b'][0])
    logits = xf @ params['whead'] + params['bhead'][0]
    return logits.reshape(B * T, VOCAB)


def init_params(key):
    ks = jax.random.split(key, 16)
    s = 0.02
    n = lambda k, shp: (s * jax.random.normal(k, shp)).astype(jnp.float32)
    L, C, F, V = N_LAYERS, N_EMBD, FF_DIM, VOCAB
    return dict(
        tok_emb=n(ks[0], (V, C)),
        pos_emb=n(ks[1], (BLOCK_SIZE, C)),
        ln1_g=jnp.ones((L, 1, C), jnp.float32),
        ln1_b=jnp.zeros((L, 1, C), jnp.float32),
        wq=n(ks[2], (L, C, C)),
        wk=n(ks[3], (L, C, C)),
        wv=n(ks[4], (L, C, C)),
        wproj=n(ks[5], (L, C, C)),
        bproj=jnp.zeros((L, 1, C), jnp.float32),
        ln2_g=jnp.ones((L, 1, C), jnp.float32),
        ln2_b=jnp.zeros((L, 1, C), jnp.float32),
        w1=n(ks[6], (L, C, F)),
        b1=jnp.zeros((L, 1, F), jnp.float32),
        w2=n(ks[7], (L, F, C)),
        b2=jnp.zeros((L, 1, C), jnp.float32),
        lnf_g=jnp.ones((1, C), jnp.float32),
        lnf_b=jnp.zeros((1, C), jnp.float32),
        whead=n(ks[8], (C, V)),
        bhead=jnp.zeros((1, V), jnp.float32),
    )


if __name__ == "__main__":
    key = jax.random.PRNGKey(0)
    pkey, ikey = jax.random.split(key)
    params = init_params(pkey)

    B, T = 2, 8   # small sequence (<= block_size)
    idx = jax.random.randint(ikey, (B, T), 0, VOCAB, dtype=jnp.int32)

    logits, loss = transformer_lm_forward(idx, params)
    logits = jax.block_until_ready(logits)
    assert logits.shape == (B * T, VOCAB)
    assert loss is None

    ref = jax.block_until_ready(reference_forward(idx, params))
    assert jnp.allclose(logits, ref, atol=2e-2, rtol=2e-2), \
        f"max abs diff {jnp.max(jnp.abs(logits - ref))}"

    print("KERNEL_OK")
</pallas_src>

<mosaic_0001>
module attributes {stable_mosaic.version = 11 : i64} {
  func.func @transformer_kernel(%arg0: i32, %arg1: memref<1x8x64xf32, #tpu.memory_space<vmem>>, %arg2: memref<6x1x64xf32, #tpu.memory_space<vmem>>, %arg3: memref<6x1x64xf32, #tpu.memory_space<vmem>>, %arg4: memref<6x64x192xbf16, #tpu.memory_space<vmem>>, %arg5: memref<6x64x64xbf16, #tpu.memory_space<vmem>>, %arg6: memref<6x1x64xf32, #tpu.memory_space<vmem>>, %arg7: memref<6x1x64xf32, #tpu.memory_space<vmem>>, %arg8: memref<6x1x64xf32, #tpu.memory_space<vmem>>, %arg9: memref<6x64x256xbf16, #tpu.memory_space<vmem>>, %arg10: memref<6x1x256xf32, #tpu.memory_space<vmem>>, %arg11: memref<6x256x64xbf16, #tpu.memory_space<vmem>>, %arg12: memref<6x1x64xf32, #tpu.memory_space<vmem>>, %arg13: memref<1x64xf32, #tpu.memory_space<vmem>>, %arg14: memref<1x64xf32, #tpu.memory_space<vmem>>, %arg15: memref<64x128xbf16, #tpu.memory_space<vmem>>, %arg16: memref<1x128xf32, #tpu.memory_space<vmem>>, %arg17: memref<1x8x128xf32, #tpu.memory_space<vmem>>) attributes {dimension_semantics = [#tpu.dimension_semantics<parallel>], iteration_bounds = array<i64: 2>, scalar_prefetch = 0 : i64, scratch_operands = 0 : i64, tpu.core_type = #tpu.core_type<tc>, window_params = [{transform_indices = @transform_0, window_bounds = array<i64: 1, 8, 64>}, {pipeline_mode = #tpu.pipeline_mode<synchronous>, transform_indices = @transform_1, window_bounds = array<i64: 6, 1, 64>}, {pipeline_mode = #tpu.pipeline_mode<synchronous>, transform_indices = @transform_2, window_bounds = array<i64: 6, 1, 64>}, {pipeline_mode = #tpu.pipeline_mode<synchronous>, transform_indices = @transform_3, window_bounds = array<i64: 6, 64, 192>}, {pipeline_mode = #tpu.pipeline_mode<synchronous>, transform_indices = @transform_4, window_bounds = array<i64: 6, 64, 64>}, {pipeline_mode = #tpu.pipeline_mode<synchronous>, transform_indices = @transform_5, window_bounds = array<i64: 6, 1, 64>}, {pipeline_mode = #tpu.pipeline_mode<synchronous>, transform_indices = @transform_6, window_bounds = array<i64: 6, 1, 64>}, {pipeline_mode = #tpu.pipeline_mode<synchronous>, transform_indices = @transform_7, window_bounds = array<i64: 6, 1, 64>}, {pipeline_mode = #tpu.pipeline_mode<synchronous>, transform_indices = @transform_8, window_bounds = array<i64: 6, 64, 256>}, {pipeline_mode = #tpu.pipeline_mode<synchronous>, transform_indices = @transform_9, window_bounds = array<i64: 6, 1, 256>}, {pipeline_mode = #tpu.pipeline_mode<synchronous>, transform_indices = @transform_10, window_bounds = array<i64: 6, 256, 64>}, {pipeline_mode = #tpu.pipeline_mode<synchronous>, transform_indices = @transform_11, window_bounds = array<i64: 6, 1, 64>}, {pipeline_mode = #tpu.pipeline_mode<synchronous>, transform_indices = @transform_12, window_bounds = array<i64: 1, 64>}, {pipeline_mode = #tpu.pipeline_mode<synchronous>, transform_indices = @transform_13, window_bounds = array<i64: 1, 64>}, {pipeline_mode = #tpu.pipeline_mode<synchronous>, transform_indices = @transform_14, window_bounds = array<i64: 64, 128>}, {pipeline_mode = #tpu.pipeline_mode<synchronous>, transform_indices = @transform_15, window_bounds = array<i64: 1, 128>}, {transform_indices = @transform_16, window_bounds = array<i64: 1, 8, 128>}]} {
    %c0 = arith.constant 0 : index
    %c0_0 = arith.constant 0 : index
    %c0_1 = arith.constant 0 : index
    %0 = vector.load %arg1[%c0, %c0_0, %c0_1] : memref<1x8x64xf32, #tpu.memory_space<vmem>>, vector<1x8x64xf32>
    %1 = vector.shape_cast %0 : vector<1x8x64xf32> to vector<8x64xf32>
    %2 = tpu.iota {dimensions = array<i32: 0>} : vector<8x8xi32>
    %3 = tpu.iota {dimensions = array<i32: 1>} : vector<8x8xi32>
    %4 = arith.cmpi sle, %3, %2 : vector<8x8xi32>
    %cst = arith.constant 0.000000e+00 : f32
    %cst_2 = arith.constant -1.000000e+09 : f32
    %5 = vector.broadcast %cst : f32 to vector<8x8xf32>
    %6 = vector.broadcast %cst_2 : f32 to vector<8x8xf32>
    %7 = arith.select %4, %5, %6 : vector<8x8xi1>, vector<8x8xf32>
    %c0_i32 = arith.constant 0 : i32
    %c6_i32 = arith.constant 6 : i32
    %8 = arith.addi %c0_i32, %c6_i32 : i32
    %c1_i32 = arith.constant 1 : i32
    %9 = scf.for %arg18 = %c0_i32 to %8 step %c1_i32 iter_args(%arg19 = %1) -> (vector<8x64xf32>)  : i32 {
      %43 = arith.index_cast %arg18 : i32 to index
      %c0_21 = arith.constant 0 : index
      %c0_22 = arith.constant 0 : index
      %44 = vector.load %arg2[%43, %c0_21, %c0_22] : memref<6x1x64xf32, #tpu.memory_space<vmem>>, vector<1x1x64xf32>
      %45 = vector.shape_cast %44 : vector<1x1x64xf32> to vector<1x64xf32>
      %46 = arith.index_cast %arg18 : i32 to index
      %c0_23 = arith.constant 0 : index
      %c0_24 = arith.constant 0 : index
      %47 = vector.load %arg3[%46, %c0_23, %c0_24] : memref<6x1x64xf32, #tpu.memory_space<vmem>>, vector<1x1x64xf32>
      %48 = vector.shape_cast %47 : vector<1x1x64xf32> to vector<1x64xf32>
      %cst_25 = arith.constant dense<0.000000e+00> : vector<8xf32>
      %49 = vector.multi_reduction <add>, %arg19, %cst_25 [1] : vector<8x64xf32> to vector<8xf32>
      %50 = vector.shape_cast %49 : vector<8xf32> to vector<8x1xf32>
      %cst_26 = arith.constant 6.400000e+01 : f32
      %51 = vector.broadcast %cst_26 : f32 to vector<8x1xf32>
      %52 = arith.divf %50, %51 : vector<8x1xf32>
      %53 = vector.broadcast %52 : vector<8x1xf32> to vector<8x64xf32>
      %54 = arith.subf %arg19, %53 : vector<8x64xf32>
      %55 = arith.mulf %54, %54 : vector<8x64xf32>
      %cst_27 = arith.constant dense<0.000000e+00> : vector<8xf32>
      %56 = vector.multi_reduction <add>, %55, %cst_27 [1] : vector<8x64xf32> to vector<8xf32>
      %57 = vector.shape_cast %56 : vector<8xf32> to vector<8x1xf32>
      %cst_28 = arith.constant 6.400000e+01 : f32
      %58 = vector.broadcast %cst_28 : f32 to vector<8x1xf32>
      %59 = arith.divf %57, %58 : vector<8x1xf32>
      %60 = vector.broadcast %52 : vector<8x1xf32> to vector<8x64xf32>
      %61 = arith.subf %arg19, %60 : vector<8x64xf32>
      %cst_29 = arith.constant 9.99999974E-6 : f32
      %62 = vector.broadcast %cst_29 : f32 to vector<8x1xf32>
      %63 = arith.addf %59, %62 : vector<8x1xf32>
      %64 = math.rsqrt %63 : vector<8x1xf32>
      %65 = vector.broadcast %64 : vector<8x1xf32> to vector<8x64xf32>
      %66 = arith.mulf %61, %65 : vector<8x64xf32>
      %67 = vector.broadcast %45 : vector<1x64xf32> to vector<8x64xf32>
      %68 = arith.mulf %66, %67 : vector<8x64xf32>
      %69 = vector.broadcast %48 : vector<1x64xf32> to vector<8x64xf32>
      %70 = arith.addf %68, %69 : vector<8x64xf32>
      %71 = arith.truncf %70 : vector<8x64xf32> to vector<8x64xbf16>
      %72 = arith.index_cast %arg18 : i32 to index
      %c0_30 = arith.constant 0 : index
      %c0_31 = arith.constant 0 : index
      %73 = vector.load %arg4[%72, %c0_30, %c0_31] : memref<6x64x192xbf16, #tpu.memory_space<vmem>>, vector<1x64x192xbf16>
      %74 = vector.shape_cast %73 : vector<1x64x192xbf16> to vector<64x192xbf16>
      %cst_32 = arith.constant dense<0.000000e+00> : vector<8x192xf32>
      %75 = tpu.matmul %71, %74, %cst_32 {dimension_numbers = #tpu.dot_dimension_numbers<[1], [0], [0], [1], [0, 0, 1, 1], [], []>} : vector<8x64xbf16>, vector<64x192xbf16>, vector<8x192xf32> -> vector<8x192xf32>
      %76 = vector.extract_strided_slice %75 {offsets = [0, 0], sizes = [8, 64], strides = [1, 1]} : vector<8x192xf32> to vector<8x64xf32>
      %77 = arith.truncf %76 : vector<8x64xf32> to vector<8x64xbf16>
      %78 = vector.extract_strided_slice %75 {offsets = [0, 64], sizes = [8, 64], strides = [1, 1]} : vector<8x192xf32> to vector<8x64xf32>
      %79 = arith.truncf %78 : vector<8x64xf32> to vector<8x64xbf16>
      %80 = vector.extract_strided_slice %75 {offsets = [0, 128], sizes = [8, 64], strides = [1, 1]} : vector<8x192xf32> to vector<8x64xf32>
      %81 = arith.truncf %80 : vector<8x64xf32> to vector<8x64xbf16>
      %82 = vector.extract_strided_slice %77 {offsets = [0, 0], sizes = [8, 16], strides = [1, 1]} : vector<8x64xbf16> to vector<8x16xbf16>
      %83 = vector.extract_strided_slice %79 {offsets = [0, 0], sizes = [8, 16], strides = [1, 1]} : vector<8x64xbf16> to vector<8x16xbf16>
      %84 = vector.extract_strided_slice %81 {offsets = [0, 0], sizes = [8, 16], strides = [1, 1]} : vector<8x64xbf16> to vector<8x16xbf16>
      "tpu.trace_start"() <{level = 10 : i32, message = "td,sd->ts"}> : () -> ()
      %cst_33 = arith.constant dense<0.000000e+00> : vector<8x8xf32>
      %85 = tpu.matmul %82, %83, %cst_33 {dimension_numbers = #tpu.dot_dimension_numbers<[1], [1], [0], [0], [0, 0, 1, 0], [], []>} : vector<8x16xbf16>, vector<8x16xbf16>, vector<8x8xf32> -> vector<8x8xf32>
      "tpu.trace_stop"() : () -> ()
      %cst_34 = arith.constant 2.500000e-01 : f32
      %86 = vector.broadcast %cst_34 : f32 to vector<8x8xf32>
      %87 = arith.mulf %85, %86 : vector<8x8xf32>
      %88 = arith.addf %87, %7 : vector<8x8xf32>
      %cst_35 = arith.constant dense<0xFF800000> : vector<8xf32>
      %89 = vector.multi_reduction <maximumf>, %88, %cst_35 [1] : vector<8x8xf32> to vector<8xf32>
      %90 = vector.shape_cast %89 : vector<8xf32> to vector<8x1xf32>
      %91 = vector.broadcast %90 : vector<8x1xf32> to vector<8x8xf32>
      %92 = arith.subf %88, %91 : vector<8x8xf32>
      %93 = math.exp %92 : vector<8x8xf32>
      %cst_36 = arith.constant dense<0.000000e+00> : vector<8xf32>
      %94 = vector.multi_reduction <add>, %93, %cst_36 [1] : vector<8x8xf32> to vector<8xf32>
      %95 = vector.shape_cast %94 : vector<8xf32> to vector<8x1xf32>
      %96 = tpu.reciprocal %95 {approx = true} : vector<8x1xf32> -> vector<8x1xf32>
      %97 = vector.broadcast %96 : vector<8x1xf32> to vector<8x8xf32>
      %98 = arith.mulf %93, %97 : vector<8x8xf32>
      %99 = arith.truncf %98 : vector<8x8xf32> to vector<8x8xbf16>
      %cst_37 = arith.constant dense<0.000000e+00> : vector<8x16xf32>
      %100 = tpu.matmul %99, %84, %cst_37 {dimension_numbers = #tpu.dot_dimension_numbers<[1], [0], [0], [1], [0, 0, 1, 1], [], []>} : vector<8x8xbf16>, vector<8x16xbf16>, vector<8x16xf32> -> vector<8x16xf32>
      %101 = vector.extract_strided_slice %77 {offsets = [0, 16], sizes = [8, 16], strides = [1, 1]} : vector<8x64xbf16> to vector<8x16xbf16>
      %102 = vector.extract_strided_slice %79 {offsets = [0, 16], sizes = [8, 16], strides = [1, 1]} : vector<8x64xbf16> to vector<8x16xbf16>
      %103 = vector.extract_strided_slice %81 {offsets = [0, 16], sizes = [8, 16], strides = [1, 1]} : vector<8x64xbf16> to vector<8x16xbf16>
      "tpu.trace_start"() <{level = 10 : i32, message = "td,sd->ts"}> : () -> ()
      %cst_38 = arith.constant dense<0.000000e+00> : vector<8x8xf32>
      %104 = tpu.matmul %101, %102, %cst_38 {dimension_numbers = #tpu.dot_dimension_numbers<[1], [1], [0], [0], [0, 0, 1, 0], [], []>} : vector<8x16xbf16>, vector<8x16xbf16>, vector<8x8xf32> -> vector<8x8xf32>
      "tpu.trace_stop"() : () -> ()
      %cst_39 = arith.constant 2.500000e-01 : f32
      %105 = vector.broadcast %cst_39 : f32 to vector<8x8xf32>
      %106 = arith.mulf %104, %105 : vector<8x8xf32>
      %107 = arith.addf %106, %7 : vector<8x8xf32>
      %cst_40 = arith.constant dense<0xFF800000> : vector<8xf32>
      %108 = vector.multi_reduction <maximumf>, %107, %cst_40 [1] : vector<8x8xf32> to vector<8xf32>
      %109 = vector.shape_cast %108 : vector<8xf32> to vector<8x1xf32>
      %110 = vector.broadcast %109 : vector<8x1xf32> to vector<8x8xf32>
      %111 = arith.subf %107, %110 : vector<8x8xf32>
      %112 = math.exp %111 : vector<8x8xf32>
      %cst_41 = arith.constant dense<0.000000e+00> : vector<8xf32>
      %113 = vector.multi_reduction <add>, %112, %cst_41 [1] : vector<8x8xf32> to vector<8xf32>
      %114 = vector.shape_cast %113 : vector<8xf32> to vector<8x1xf32>
      %115 = tpu.reciprocal %114 {approx = true} : vector<8x1xf32> -> vector<8x1xf32>
      %116 = vector.broadcast %115 : vector<8x1xf32> to vector<8x8xf32>
      %117 = arith.mulf %112, %116 : vector<8x8xf32>
      %118 = arith.truncf %117 : vector<8x8xf32> to vector<8x8xbf16>
      %cst_42 = arith.constant dense<0.000000e+00> : vector<8x16xf32>
      %119 = tpu.matmul %118, %103, %cst_42 {dimension_numbers = #tpu.dot_dimension_numbers<[1], [0], [0], [1], [0, 0, 1, 1], [], []>} : vector<8x8xbf16>, vector<8x16xbf16>, vector<8x16xf32> -> vector<8x16xf32>
      %120 = vector.extract_strided_slice %77 {offsets = [0, 32], sizes = [8, 16], strides = [1, 1]} : vector<8x64xbf16> to vector<8x16xbf16>
      %121 = vector.extract_strided_slice %79 {offsets = [0, 32], sizes = [8, 16], strides = [1, 1]} : vector<8x64xbf16> to vector<8x16xbf16>
      %122 = vector.extract_strided_slice %81 {offsets = [0, 32], sizes = [8, 16], strides = [1, 1]} : vector<8x64xbf16> to vector<8x16xbf16>
      "tpu.trace_start"() <{level = 10 : i32, message = "td,sd->ts"}> : () -> ()
      %cst_43 = arith.constant dense<0.000000e+00> : vector<8x8xf32>
      %123 = tpu.matmul %120, %121, %cst_43 {dimension_numbers = #tpu.dot_dimension_numbers<[1], [1], [0], [0], [0, 0, 1, 0], [], []>} : vector<8x16xbf16>, vector<8x16xbf16>, vector<8x8xf32> -> vector<8x8xf32>
      "tpu.trace_stop"() : () -> ()
      %cst_44 = arith.constant 2.500000e-01 : f32
      %124 = vector.broadcast %cst_44 : f32 to vector<8x8xf32>
      %125 = arith.mulf %123, %124 : vector<8x8xf32>
      %126 = arith.addf %125, %7 : vector<8x8xf32>
      %cst_45 = arith.constant dense<0xFF800000> : vector<8xf32>
      %127 = vector.multi_reduction <maximumf>, %126, %cst_45 [1] : vector<8x8xf32> to vector<8xf32>
      %128 = vector.shape_cast %127 : vector<8xf32> to vector<8x1xf32>
      %129 = vector.broadcast %128 : vector<8x1xf32> to vector<8x8xf32>
      %130 = arith.subf %126, %129 : vector<8x8xf32>
      %131 = math.exp %130 : vector<8x8xf32>
      %cst_46 = arith.constant dense<0.000000e+00> : vector<8xf32>
      %132 = vector.multi_reduction <add>, %131, %cst_46 [1] : vector<8x8xf32> to vector<8xf32>
      %133 = vector.shape_cast %132 : vector<8xf32> to vector<8x1xf32>
      %134 = tpu.reciprocal %133 {approx = true} : vector<8x1xf32> -> vector<8x1xf32>
      %135 = vector.broadcast %134 : vector<8x1xf32> to vector<8x8xf32>
      %136 = arith.mulf %131, %135 : vector<8x8xf32>
      %137 = arith.truncf %136 : vector<8x8xf32> to vector<8x8xbf16>
      %cst_47 = arith.constant dense<0.000000e+00> : vector<8x16xf32>
      %138 = tpu.matmul %137, %122, %cst_47 {dimension_numbers = #tpu.dot_dimension_numbers<[1], [0], [0], [1], [0, 0, 1, 1], [], []>} : vector<8x8xbf16>, vector<8x16xbf16>, vector<8x16xf32> -> vector<8x16xf32>
      %139 = vector.extract_strided_slice %77 {offsets = [0, 48], sizes = [8, 16], strides = [1, 1]} : vector<8x64xbf16> to vector<8x16xbf16>
      %140 = vector.extract_strided_slice %79 {offsets = [0, 48], sizes = [8, 16], strides = [1, 1]} : vector<8x64xbf16> to vector<8x16xbf16>
      %141 = vector.extract_strided_slice %81 {offsets = [0, 48], sizes = [8, 16], strides = [1, 1]} : vector<8x64xbf16> to vector<8x16xbf16>
      "tpu.trace_start"() <{level = 10 : i32, message = "td,sd->ts"}> : () -> ()
      %cst_48 = arith.constant dense<0.000000e+00> : vector<8x8xf32>
      %142 = tpu.matmul %139, %140, %cst_48 {dimension_numbers = #tpu.dot_dimension_numbers<[1], [1], [0], [0], [0, 0, 1, 0], [], []>} : vector<8x16xbf16>, vector<8x16xbf16>, vector<8x8xf32> -> vector<8x8xf32>
      "tpu.trace_stop"() : () -> ()
      %cst_49 = arith.constant 2.500000e-01 : f32
      %143 = vector.broadcast %cst_49 : f32 to vector<8x8xf32>
      %144 = arith.mulf %142, %143 : vector<8x8xf32>
      %145 = arith.addf %144, %7 : vector<8x8xf32>
      %cst_50 = arith.constant dense<0xFF800000> : vector<8xf32>
      %146 = vector.multi_reduction <maximumf>, %145, %cst_50 [1] : vector<8x8xf32> to vector<8xf32>
      %147 = vector.shape_cast %146 : vector<8xf32> to vector<8x1xf32>
      %148 = vector.broadcast %147 : vector<8x1xf32> to vector<8x8xf32>
      %149 = arith.subf %145, %148 : vector<8x8xf32>
      %150 = math.exp %149 : vector<8x8xf32>
      %cst_51 = arith.constant dense<0.000000e+00> : vector<8xf32>
      %151 = vector.multi_reduction <add>, %150, %cst_51 [1] : vector<8x8xf32> to vector<8xf32>
      %152 = vector.shape_cast %151 : vector<8xf32> to vector<8x1xf32>
      %153 = tpu.reciprocal %152 {approx = true} : vector<8x1xf32> -> vector<8x1xf32>
      %154 = vector.broadcast %153 : vector<8x1xf32> to vector<8x8xf32>
      %155 = arith.mulf %150, %154 : vector<8x8xf32>
      %156 = arith.truncf %155 : vector<8x8xf32> to vector<8x8xbf16>
      %cst_52 = arith.constant dense<0.000000e+00> : vector<8x16xf32>
      %157 = tpu.matmul %156, %141, %cst_52 {dimension_numbers = #tpu.dot_dimension_numbers<[1], [0], [0], [1], [0, 0, 1, 1], [], []>} : vector<8x8xbf16>, vector<8x16xbf16>, vector<8x16xf32> -> vector<8x16xf32>
      %158 = tpu.concatenate %100, %119, %138, %157 in 1 : vector<8x16xf32>, vector<8x16xf32>, vector<8x16xf32>, vector<8x16xf32> -> vector<8x64xf32>
      %159 = arith.truncf %158 : vector<8x64xf32> to vector<8x64xbf16>
      %160 = arith.index_cast %arg18 : i32 to index
      %c0_53 = arith.constant 0 : index
      %c0_54 = arith.constant 0 : index
      %161 = vector.load %arg5[%160, %c0_53, %c0_54] : memref<6x64x64xbf16, #tpu.memory_space<vmem>>, vector<1x64x64xbf16>
      %162 = vector.shape_cast %161 : vector<1x64x64xbf16> to vector<64x64xbf16>
      %cst_55 = arith.constant dense<0.000000e+00> : vector<8x64xf32>
      %163 = tpu.matmul %159, %162, %cst_55 {dimension_numbers = #tpu.dot_dimension_numbers<[1], [0], [0], [1], [0, 0, 1, 1], [], []>} : vector<8x64xbf16>, vector<64x64xbf16>, vector<8x64xf32> -> vector<8x64xf32>
      %164 = arith.index_cast %arg18 : i32 to index
      %c0_56 = arith.constant 0 : index
      %c0_57 = arith.constant 0 : index
      %165 = vector.load %arg6[%164, %c0_56, %c0_57] : memref<6x1x64xf32, #tpu.memory_space<vmem>>, vector<1x1x64xf32>
      %166 = vector.shape_cast %165 : vector<1x1x64xf32> to vector<1x64xf32>
      %167 = vector.broadcast %166 : vector<1x64xf32> to vector<8x64xf32>
      %168 = arith.addf %163, %167 : vector<8x64xf32>
      %169 = arith.addf %arg19, %168 : vector<8x64xf32>
      %170 = arith.index_cast %arg18 : i32 to index
      %c0_58 = arith.constant 0 : index
      %c0_59 = arith.constant 0 : index
      %171 = vector.load %arg7[%170, %c0_58, %c0_59] : memref<6x1x64xf32, #tpu.memory_space<vmem>>, vector<1x1x64xf32>
      %172 = vector.shape_cast %171 : vector<1x1x64xf32> to vector<1x64xf32>
      %173 = arith.index_cast %arg18 : i32 to index
      %c0_60 = arith.constant 0 : index
      %c0_61 = arith.constant 0 : index
      %174 = vector.load %arg8[%173, %c0_60, %c0_61] : memref<6x1x64xf32, #tpu.memory_space<vmem>>, vector<1x1x64xf32>
      %175 = vector.shape_cast %174 : vector<1x1x64xf32> to vector<1x64xf32>
      %cst_62 = arith.constant dense<0.000000e+00> : vector<8xf32>
      %176 = vector.multi_reduction <add>, %169, %cst_62 [1] : vector<8x64xf32> to vector<8xf32>
      %177 = vector.shape_cast %176 : vector<8xf32> to vector<8x1xf32>
      %cst_63 = arith.constant 6.400000e+01 : f32
      %178 = vector.broadcast %cst_63 : f32 to vector<8x1xf32>
      %179 = arith.divf %177, %178 : vector<8x1xf32>
      %180 = vector.broadcast %179 : vector<8x1xf32> to vector<8x64xf32>
      %181 = arith.subf %169, %180 : vector<8x64xf32>
      %182 = arith.mulf %181, %181 : vector<8x64xf32>
      %cst_64 = arith.constant dense<0.000000e+00> : vector<8xf32>
      %183 = vector.multi_reduction <add>, %182, %cst_64 [1] : vector<8x64xf32> to vector<8xf32>
      %184 = vector.shape_cast %183 : vector<8xf32> to vector<8x1xf32>
      %cst_65 = arith.constant 6.400000e+01 : f32
      %185 = vector.broadcast %cst_65 : f32 to vector<8x1xf32>
      %186 = arith.divf %184, %185 : vector<8x1xf32>
      %187 = vector.broadcast %179 : vector<8x1xf32> to vector<8x64xf32>
      %188 = arith.subf %169, %187 : vector<8x64xf32>
      %cst_66 = arith.constant 9.99999974E-6 : f32
      %189 = vector.broadcast %cst_66 : f32 to vector<8x1xf32>
      %190 = arith.addf %186, %189 : vector<8x1xf32>
      %191 = math.rsqrt %190 : vector<8x1xf32>
      %192 = vector.broadcast %191 : vector<8x1xf32> to vector<8x64xf32>
      %193 = arith.mulf %188, %192 : vector<8x64xf32>
      %194 = vector.broadcast %172 : vector<1x64xf32> to vector<8x64xf32>
      %195 = arith.mulf %193, %194 : vector<8x64xf32>
      %196 = vector.broadcast %175 : vector<1x64xf32> to vector<8x64xf32>
      %197 = arith.addf %195, %196 : vector<8x64xf32>
      %198 = arith.truncf %197 : vector<8x64xf32> to vector<8x64xbf16>
      %199 = arith.index_cast %arg18 : i32 to index
      %c0_67 = arith.constant 0 : index
      %c0_68 = arith.constant 0 : index
      %200 = vector.load %arg9[%199, %c0_67, %c0_68] : memref<6x64x256xbf16, #tpu.memory_space<vmem>>, vector<1x64x256xbf16>
      %201 = vector.shape_cast %200 : vector<1x64x256xbf16> to vector<64x256xbf16>
      %cst_69 = arith.constant dense<0.000000e+00> : vector<8x256xf32>
      %202 = tpu.matmul %198, %201, %cst_69 {dimension_numbers = #tpu.dot_dimension_numbers<[1], [0], [0], [1], [0, 0, 1, 1], [], []>} : vector<8x64xbf16>, vector<64x256xbf16>, vector<8x256xf32> -> vector<8x256xf32>
      %203 = arith.index_cast %arg18 : i32 to index
      %c0_70 = arith.constant 0 : index
      %c0_71 = arith.constant 0 : index
      %204 = vector.load %arg10[%203, %c0_70, %c0_71] : memref<6x1x256xf32, #tpu.memory_space<vmem>>, vector<1x1x256xf32>
      %205 = vector.shape_cast %204 : vector<1x1x256xf32> to vector<1x256xf32>
      %206 = vector.broadcast %205 : vector<1x256xf32> to vector<8x256xf32>
      %207 = arith.addf %202, %206 : vector<8x256xf32>
      %cst_72 = arith.constant 0.000000e+00 : f32
      %208 = vector.broadcast %cst_72 : f32 to vector<8x256xf32>
      %209 = arith.maximumf %207, %208 : vector<8x256xf32>
      %210 = arith.truncf %209 : vector<8x256xf32> to vector<8x256xbf16>
      %211 = arith.index_cast %arg18 : i32 to index
      %c0_73 = arith.constant 0 : index
      %c0_74 = arith.constant 0 : index
      %212 = vector.load %arg11[%211, %c0_73, %c0_74] : memref<6x256x64xbf16, #tpu.memory_space<vmem>>, vector<1x256x64xbf16>
      %213 = vector.shape_cast %212 : vector<1x256x64xbf16> to vector<256x64xbf16>
      %cst_75 = arith.constant dense<0.000000e+00> : vector<8x64xf32>
      %214 = tpu.matmul %210, %213, %cst_75 {dimension_numbers = #tpu.dot_dimension_numbers<[1], [0], [0], [1], [0, 0, 1, 1], [], []>} : vector<8x256xbf16>, vector<256x64xbf16>, vector<8x64xf32> -> vector<8x64xf32>
      %215 = arith.index_cast %arg18 : i32 to index
      %c0_76 = arith.constant 0 : index
      %c0_77 = arith.constant 0 : index
      %216 = vector.load %arg12[%215, %c0_76, %c0_77] : memref<6x1x64xf32, #tpu.memory_space<vmem>>, vector<1x1x64xf32>
      %217 = vector.shape_cast %216 : vector<1x1x64xf32> to vector<1x64xf32>
      %218 = vector.broadcast %217 : vector<1x64xf32> to vector<8x64xf32>
      %219 = arith.addf %214, %218 : vector<8x64xf32>
      %220 = arith.addf %169, %219 : vector<8x64xf32>
      scf.yield %220 : vector<8x64xf32>
    }
    %c6_i32_3 = arith.constant 6 : i32
    %c0_4 = arith.constant 0 : index
    %c0_5 = arith.constant 0 : index
    %10 = vector.load %arg13[%c0_4, %c0_5] : memref<1x64xf32, #tpu.memory_space<vmem>>, vector<1x64xf32>
    %c0_6 = arith.constant 0 : index
    %c0_7 = arith.constant 0 : index
    %11 = vector.load %arg14[%c0_6, %c0_7] : memref<1x64xf32, #tpu.memory_space<vmem>>, vector<1x64xf32>
    %cst_8 = arith.constant dense<0.000000e+00> : vector<8xf32>
    %12 = vector.multi_reduction <add>, %9, %cst_8 [1] : vector<8x64xf32> to vector<8xf32>
    %13 = vector.shape_cast %12 : vector<8xf32> to vector<8x1xf32>
    %cst_9 = arith.constant 6.400000e+01 : f32
    %14 = vector.broadcast %cst_9 : f32 to vector<8x1xf32>
    %15 = arith.divf %13, %14 : vector<8x1xf32>
    %16 = vector.broadcast %15 : vector<8x1xf32> to vector<8x64xf32>
    %17 = arith.subf %9, %16 : vector<8x64xf32>
    %18 = arith.mulf %17, %17 : vector<8x64xf32>
    %cst_10 = arith.constant dense<0.000000e+00> : vector<8xf32>
    %19 = vector.multi_reduction <add>, %18, %cst_10 [1] : vector<8x64xf32> to vector<8xf32>
    %20 = vector.shape_cast %19 : vector<8xf32> to vector<8x1xf32>
    %cst_11 = arith.constant 6.400000e+01 : f32
    %21 = vector.broadcast %cst_11 : f32 to vector<8x1xf32>
    %22 = arith.divf %20, %21 : vector<8x1xf32>
    %23 = vector.broadcast %15 : vector<8x1xf32> to vector<8x64xf32>
    %24 = arith.subf %9, %23 : vector<8x64xf32>
    %cst_12 = arith.constant 9.99999974E-6 : f32
    %25 = vector.broadcast %cst_12 : f32 to vector<8x1xf32>
    %26 = arith.addf %22, %25 : vector<8x1xf32>
    %27 = math.rsqrt %26 : vector<8x1xf32>
    %28 = vector.broadcast %27 : vector<8x1xf32> to vector<8x64xf32>
    %29 = arith.mulf %24, %28 : vector<8x64xf32>
    %30 = vector.broadcast %10 : vector<1x64xf32> to vector<8x64xf32>
    %31 = arith.mulf %29, %30 : vector<8x64xf32>
    %32 = vector.broadcast %11 : vector<1x64xf32> to vector<8x64xf32>
    %33 = arith.addf %31, %32 : vector<8x64xf32>
    %34 = arith.truncf %33 : vector<8x64xf32> to vector<8x64xbf16>
    %c0_13 = arith.constant 0 : index
    %c0_14 = arith.constant 0 : index
    %35 = vector.load %arg15[%c0_13, %c0_14] : memref<64x128xbf16, #tpu.memory_space<vmem>>, vector<64x128xbf16>
    %cst_15 = arith.constant dense<0.000000e+00> : vector<8x128xf32>
    %36 = tpu.matmul %34, %35, %cst_15 {dimension_numbers = #tpu.dot_dimension_numbers<[1], [0], [0], [1], [0, 0, 1, 1], [], []>} : vector<8x64xbf16>, vector<64x128xbf16>, vector<8x128xf32> -> vector<8x128xf32>
    %c0_16 = arith.constant 0 : index
    %c0_17 = arith.constant 0 : index
    %37 = vector.load %arg16[%c0_16, %c0_17] : memref<1x128xf32, #tpu.memory_space<vmem>>, vector<1x128xf32>
    %38 = vector.broadcast %37 : vector<1x128xf32> to vector<8x128xf32>
    %39 = arith.addf %36, %38 : vector<8x128xf32>
    %c0_18 = arith.constant 0 : index
    %c0_19 = arith.constant 0 : index
    %c0_20 = arith.constant 0 : index
    %40 = vector.load %arg17[%c0_18, %c0_19, %c0_20] : memref<1x8x128xf32, #tpu.memory_space<vmem>>, vector<1x8x128xf32>
    %41 = vector.shape_cast %40 : vector<1x8x128xf32> to vector<8x128xf32>
    %42 = vector.shape_cast %39 : vector<8x128xf32> to vector<1x8x128xf32>
    tpu.vector_store %arg17[%c0_18, %c0_19, %c0_20], %42 {strides = array<i32>} : memref<1x8x128xf32, #tpu.memory_space<vmem>>, vector<1x8x128xf32>,
    return
  }
  func.func @transform_0(%arg0: i32) -> (i32, i32, i32) {
    %c0_i32 = arith.constant 0 : i32
    %c0_i32_0 = arith.constant 0 : i32
    %c0_i32_1 = arith.constant 0 : i32
    return %arg0, %c0_i32, %c0_i32_0 : i32, i32, i32
  }
  func.func @transform_1(%arg0: i32) -> (i32, i32, i32) {
    %c0_i32 = arith.constant 0 : i32
    %c0_i32_0 = arith.constant 0 : i32
    %c0_i32_1 = arith.constant 0 : i32
    %c0_i32_2 = arith.constant 0 : i32
    return %c0_i32, %c0_i32_0, %c0_i32_1 : i32, i32, i32
  }
  func.func @transform_2(%arg0: i32) -> (i32, i32, i32) {
    %c0_i32 = arith.constant 0 : i32
    %c0_i32_0 = arith.constant 0 : i32
    %c0_i32_1 = arith.constant 0 : i32
    %c0_i32_2 = arith.constant 0 : i32
    return %c0_i32, %c0_i32_0, %c0_i32_1 : i32, i32, i32
  }
  func.func @transform_3(%arg0: i32) -> (i32, i32, i32) {
    %c0_i32 = arith.constant 0 : i32
    %c0_i32_0 = arith.constant 0 : i32
    %c0_i32_1 = arith.constant 0 : i32
    %c0_i32_2 = arith.constant 0 : i32
    return %c0_i32, %c0_i32_0, %c0_i32_1 : i32, i32, i32
  }
  func.func @transform_4(%arg0: i32) -> (i32, i32, i32) {
    %c0_i32 = arith.constant 0 : i32
    %c0_i32_0 = arith.constant 0 : i32
    %c0_i32_1 = arith.constant 0 : i32
    %c0_i32_2 = arith.constant 0 : i32
    return %c0_i32, %c0_i32_0, %c0_i32_1 : i32, i32, i32
  }
  func.func @transform_5(%arg0: i32) -> (i32, i32, i32) {
    %c0_i32 = arith.constant 0 : i32
    %c0_i32_0 = arith.constant 0 : i32
    %c0_i32_1 = arith.constant 0 : i32
    %c0_i32_2 = arith.constant 0 : i32
    return %c0_i32, %c0_i32_0, %c0_i32_1 : i32, i32, i32
  }
  func.func @transform_6(%arg0: i32) -> (i32, i32, i32) {
    %c0_i32 = arith.constant 0 : i32
    %c0_i32_0 = arith.constant 0 : i32
    %c0_i32_1 = arith.constant 0 : i32
    %c0_i32_2 = arith.constant 0 : i32
    return %c0_i32, %c0_i32_0, %c0_i32_1 : i32, i32, i32
  }
  func.func @transform_7(%arg0: i32) -> (i32, i32, i32) {
    %c0_i32 = arith.constant 0 : i32
    %c0_i32_0 = arith.constant 0 : i32
    %c0_i32_1 = arith.constant 0 : i32
    %c0_i32_2 = arith.constant 0 : i32
    return %c0_i32, %c0_i32_0, %c0_i32_1 : i32, i32, i32
  }
  func.func @transform_8(%arg0: i32) -> (i32, i32, i32) {
    %c0_i32 = arith.constant 0 : i32
    %c0_i32_0 = arith.constant 0 : i32
    %c0_i32_1 = arith.constant 0 : i32
    %c0_i32_2 = arith.constant 0 : i32
    return %c0_i32, %c0_i32_0, %c0_i32_1 : i32, i32, i32
  }
  func.func @transform_9(%arg0: i32) -> (i32, i32, i32) {
    %c0_i32 = arith.constant 0 : i32
    %c0_i32_0 = arith.constant 0 : i32
    %c0_i32_1 = arith.constant 0 : i32
    %c0_i32_2 = arith.constant 0 : i32
    return %c0_i32, %c0_i32_0, %c0_i32_1 : i32, i32, i32
  }
  func.func @transform_10(%arg0: i32) -> (i32, i32, i32) {
    %c0_i32 = arith.constant 0 : i32
    %c0_i32_0 = arith.constant 0 : i32
    %c0_i32_1 = arith.constant 0 : i32
    %c0_i32_2 = arith.constant 0 : i32
    return %c0_i32, %c0_i32_0, %c0_i32_1 : i32, i32, i32
  }
  func.func @transform_11(%arg0: i32) -> (i32, i32, i32) {
    %c0_i32 = arith.constant 0 : i32
    %c0_i32_0 = arith.constant 0 : i32
    %c0_i32_1 = arith.constant 0 : i32
    %c0_i32_2 = arith.constant 0 : i32
    return %c0_i32, %c0_i32_0, %c0_i32_1 : i32, i32, i32
  }
  func.func @transform_12(%arg0: i32) -> (i32, i32) {
    %c0_i32 = arith.constant 0 : i32
    %c0_i32_0 = arith.constant 0 : i32
    %c0_i32_1 = arith.constant 0 : i32
    return %c0_i32, %c0_i32_0 : i32, i32
  }
  func.func @transform_13(%arg0: i32) -> (i32, i32) {
    %c0_i32 = arith.constant 0 : i32
    %c0_i32_0 = arith.constant 0 : i32
    %c0_i32_1 = arith.constant 0 : i32
    return %c0_i32, %c0_i32_0 : i32, i32
  }
  func.func @transform_14(%arg0: i32) -> (i32, i32) {
    %c0_i32 = arith.constant 0 : i32
    %c0_i32_0 = arith.constant 0 : i32
    %c0_i32_1 = arith.constant 0 : i32
    return %c0_i32, %c0_i32_0 : i32, i32
  }
  func.func @transform_15(%arg0: i32) -> (i32, i32) {
    %c0_i32 = arith.constant 0 : i32
    %c0_i32_0 = arith.constant 0 : i32
    %c0_i32_1 = arith.constant 0 : i32
    return %c0_i32, %c0_i32_0 : i32, i32
  }
  func.func @transform_16(%arg0: i32) -> (i32, i32, i32) {
    %c0_i32 = arith.constant 0 : i32
    %c0_i32_0 = arith.constant 0 : i32
    %c0_i32_1 = arith.constant 0 : i32
    return %arg0, %c0_i32, %c0_i32_0 : i32, i32, i32
  }
}

</mosaic_0001>

<bundles_post_ra>
// kernel: tpu_custom_call.1
= control target key start
LH: loop header
LB: loop body
LE: loop exit
PB: predicated region body
PF: predicated region fallthrough
CT: control target
= control target key end

     0   :  { %s2284_s0 = inlined_call_operand.vmem [shape: f32[2,8,64], index: 0, kind: input, shape index: {}]   ;;  %s2285_s1 = inlined_call_operand.vmem [shape: f32[6,1,64], index: 1, kind: input, shape index: {}]   ;;  %s2286_s2 = inlined_call_operand.vmem [shape: f32[6,1,64], index: 2, kind: input, shape index: {}]   ;;  %s2287_s3 = inlined_call_operand.vmem [shape: bf16[6,64,192], index: 3, kind: input, shape index: {}]   ;;  %s2288_s4 = inlined_call_operand.vmem [shape: bf16[6,64,64], index: 4, kind: input, shape index: {}]   ;;  %s2289_s5 = inlined_call_operand.vmem [shape: f32[6,1,64], index: 5, kind: input, shape index: {}]   ;;  %s2290_s6 = inlined_call_operand.vmem [shape: f32[6,1,64], index: 6, kind: input, shape index: {}]   ;;  %s2291_s7 = inlined_call_operand.vmem [shape: f32[6,1,64], index: 7, kind: input, shape index: {}]   ;;  %s2292_s8 = inlined_call_operand.vmem [shape: bf16[6,64,256], index: 8, kind: input, shape index: {}]   ;;  %s2293_s9 = inlined_call_operand.vmem [shape: f32[6,1,256], index: 9, kind: input, shape index: {}]   ;;  %s2294_s10 = inlined_call_operand.vmem [shape: bf16[6,256,64], index: 10, kind: input, shape index: {}]   ;;  %s2295_s11 = inlined_call_operand.vmem [shape: f32[6,1,64], index: 11, kind: input, shape index: {}]   ;;  %s2296_s12 = inlined_call_operand.vmem [shape: f32[1,64], index: 12, kind: input, shape index: {}]   ;;  %s2297_s13 = inlined_call_operand.vmem [shape: f32[1,64], index: 13, kind: input, shape index: {}]   ;;  %s2298_s14 = inlined_call_operand.vmem [shape: bf16[64,128], index: 14, kind: input, shape index: {}]   ;;  %s2299_s15 = inlined_call_operand.vmem [shape: f32[1,128], index: 15, kind: input, shape index: {}]   ;;  %s2300_s16 = inlined_call_operand.hbm [shape: f32[2,8,128], index: 16, kind: output, shape index: {}]  }
   0x1   :  { %2308 = sst [smem:[#allocation11_spill]] %s2284_s0 }
   0x2   :  { %2309 = sst [smem:[#allocation12_spill]] %s2285_s1 }
   0x3   :  { %2310 = sst [smem:[#allocation13_spill]] %s2286_s2 }
   0x4   :  { %21 = vsyncpa [#allocation3], 0 }
   0x5   :  { %23 = vsyncpa [#allocation3 + $0x1], 0  ;;  %s1958_s21 = smov 0   ;;  %s1960_s22 = smov 0  }
   0x6   :  { %s1962_s23 = smov 0   ;;  %s1964_s24 = smov 0  }
   0x7 LB: > { %2311 = sst [smem:[#allocation5_spill]] %s1842_s21  ;;  %s1979_s25 = sadd.s32 4294967295, %s1854_s24   ;;  %s1854_s24 = sphi %s1964_s24, %s2329_s24   ;;  %s1850_s23 = sphi %s1962_s23, %s2331_s23   ;;  %s1846_s22 = sphi %s1960_s22, %s2333_s22   ;;  %s1842_s21 = sphi %s1958_s21, %s2332_s21  }
   0x8   : > { %2312 = sst [smem:[#allocation6_spill]] %s1850_s23  ;;  %s1451_s26 = sadd.s32 4294967294, %s1854_s24  }
   0x9   : > { %2313 = sst [smem:[#allocation7_spill]] %s1854_s24  ;;  %s1983_s27 = sadd.s32 1, %s1854_s24  }
   0xa   : > { %2314 = sst [smem:[#allocation8_spill]] %s1983_s27  ;;  %s377_s28 = sadd.s32 1, %s1850_s23 }
   0xb   : > { %s374_s29 = ssub.s32 %s1854_s24, %s1983_s27  ;;  %p387_p0 = scmp.ne.s32.totalorder %s1850_s23, %s1846_s22 }
   0xc   : > { %p375_p1 = scmp.eq.s32.totalorder %s374_s29, 0  ;;  %p388_p2 = scmp.eq.s32.totalorder %s1979_s25, 1 }
   0xd   : > { %p393_p3 = scmp.ne.s32.totalorder %s1846_s22, %s1842_s21  ;;  %p394_p4 = scmp.eq.s32.totalorder %s1451_s26, 1 }
   0xe   : > { %s1994_s30 = scalar_select %p375_p1, %s1850_s23, %s377_s28  }
   0xf   : > { %p1996_p5 = por %p388_p2, %p387_p0  ;;  %p2000_p6 = por %p394_p4, %p393_p3 }
  0x10   : > { %2315 = sst [smem:[#allocation9_spill]] %s1994_s30  ;;  %p1454_p7 = scmp.ge.s32.totalorder %s1854_s24, 1 }
  0x11   : > { %s2317_s17 = scalar_select %p2000_p6, 1, 0 }
  0x12   : > { %p464_p8 = scmp.lt.s32.totalorder %s1854_s24, 3 }
  0x13   : > { %2318 = sst [smem:[#allocation10_spill]] %s2317_s17 }
  0x14   : > { %p465_p9 = pnand %p1454_p7, %p464_p8 }
  0x15   : > { %s2305_s18 = sand.u32 (!%p465_p9), 1, %s1846_s22   ;;  %p513_p10 = scmp.lt.s32.totalorder (!%p465_p9), %s1979_s25, 1 }
  0x16   : > { %468 = sbr.rel (%p465_p9) target bundleno = 3098 (0xc1a), region = 84  ;;  %s2010_s19 = sshll.u32 (!%p465_p9), %s2305_s18, 3 }
  0x17   : > { %s2319_s30 = sld [smem:[#allocation11_spill]] (!%p465_p9)  ;;  %s2021_s17 = smov (!%p465_p9), 0  }
  0x1b   : > { %v519_v0 = vlaneseq  ;;  %s514_s20 = scalar_select %p513_p10, %s1979_s25, 1  ;;  %v1864_v3 = vmov -1e+09  }
  0x1d   : > { %v520_v1 = vshrl.u32 %v519_v0, 7  ;;  %v522_v2 = vand.u32 127, %v519_v0  ;;  %s1456_s26 = sshll.u32 %s514_s20, 3 }
  0x1e   : > { %s516_s23 = scalar_lea.vmem %s2319_s30, %s1456_s26 }
  0x1f   : > { %vm523_vm0 = vcmp.le.s32.totalorder %v522_v2, %v520_v1  ;;  %v518_v5 = vld [vmem:[%s516_s23] sm:$0xff]  }
  0x20   : > { %v2013_v4 = vsel %vm523_vm0, 0.0, %v1864_v3 }
  0x21 LB: >> { %vm536_vm1 = vcmask 523264   ;;  %v1865_v7 = vmov 64.0   ;;  %s2320_s1 = sld [smem:[#allocation12_spill]]  ;;  %s1643_s18 = sshll.u32 %s1862_s17, 6  ;;  %vm700_vm6 = vcmask 1043456   ;;  %vm662_vm7 = vcmask 130048   ;;  %s1862_s17 = sphi %s2021_s17, %s530_s17   ;;  %v1858_v5 = vphi %v518_v5, %v2322_v5  }
  0x22   : >> { %v537_v6 = vsel %vm536_vm1, %v1858_v5, 0.0  ;;  %1757 = vrcp.f32 %v1865_v7  ;;  %s2321_s2 = sld [smem:[#allocation13_spill]]  ;;  %s2050_s24 = scalar_lea.vmem %s2287_s3, %s1643_s18  ;;  %vm684_vm8 = vcmask 64512   ;;  %vm907_vm9 = vcmask 261120  }
  0x23   : >> { %538 = vadd.xlane.f32.xlu0 %v537_v6  ;;  %v1485_v19 = vld [vmem:[%s2050_s24 + $0x30] sm:$0xf]  ;;  %v1651_v20 = vld [vmem:[%s2050_s24 + $0x34] sm:$0xf0]  ;;  %v1477_v22 = vld [vmem:[%s2050_s24 + $0x20] sm:$0xf] }
  0x24   : >> { %v1486_v21 = vor.u32 %v1651_v20, %v1485_v19  ;;  %v1649_v23 = vld [vmem:[%s2050_s24 + $0x24] sm:$0xf0]  ;;  %v1469_v25 = vld [vmem:[%s2050_s24 + $0x10] sm:$0xf]  ;;  %v1647_v26 = vld [vmem:[%s2050_s24 + $0x14] sm:$0xf0] }
  0x25   : >> { %v1478_v24 = vor.u32 %v1649_v23, %v1477_v22  ;;  %v1470_v27 = vor.u32 %v1647_v26, %v1469_v25  ;;  %v1461_v28 = vld [vmem:[%s2050_s24] sm:$0xf]  ;;  %v1645_v29 = vld [vmem:[%s2050_s24 + $0x4] sm:$0xf0]  ;;  %v1650_v31 = vld [vmem:[%s2050_s24 + $0x34] sm:$0xf] }
  0x26   : >> { %633 = vmatpush.bf16.msra.mxu1 %v1486_v21  ;;  %v1462_v30 = vor.u32 %v1645_v29, %v1461_v28  ;;  %v1487_v32 = vld [vmem:[%s2050_s24 + $0x38] sm:$0xf0]  ;;  %v1648_v34 = vld [vmem:[%s2050_s24 + $0x24] sm:$0xf]  ;;  %v1479_v35 = vld [vmem:[%s2050_s24 + $0x28] sm:$0xf0] }
  0x27   : >> { %s532_s20 = scalar_lea.vmem %s2320_s1, %s1862_s17  ;;  %v1490_v33 = vor.u32 %v1650_v31, %v1487_v32  ;;  %v1482_v37 = vor.u32 %v1648_v34, %v1479_v35  ;;  %v1646_v39 = vld [vmem:[%s2050_s24 + $0x14] sm:$0xf]  ;;  %v1471_v40 = vld [vmem:[%s2050_s24 + $0x18] sm:$0xf0]  ;;  %v1644_v43 = vld [vmem:[%s2050_s24 + $0x4] sm:$0xf] }
  0x28   : >> { %v1758_v8 = vpop.eup %1757  ;;  %s534_s29 = scalar_lea.vmem %s2321_s2, %s1862_s17  ;;  %v1474_v42 = vor.u32 %v1646_v39, %v1471_v40  ;;  %v1463_v44 = vld [vmem:[%s2050_s24 + $0x8] sm:$0xf0]  ;;  %v1751_v52 = vld [vmem:[%s532_s20] ss:$0 sm:$0xff]  ;;  %s1866_s30 = smov 112   ;;  %vm909_vm10 = vcmask 392192  }
  0x29   : >> { %v541_v9 = vmul.f32 64.0, %v1758_v8  ;;  %vm545_vm2 = vweird.f32 %v1758_v8  ;;  %v1466_v45 = vor.u32 %v1644_v43, %v1463_v44  ;;  %v1752_v55 = vld [vmem:[%s534_s29] ss:$0 sm:$0xff]  ;;  %s1867_s20 = smov 64   ;;  %s1868_s26 = smov 80  }
  0x2a   : >> { %634 = vmatpush.bf16.msra.mxu1 %v1478_v24  ;;  %s1869_s28 = smov 96   ;;  %s1870_s29 = smov 48  }
  0x2b   : >> { %v542_v10 = vsub.f32 1.0, %v541_v9  ;;  %s1871_s21 = smov 16   ;;  %s1872_s27 = smov 32  }
  0x2c   : >> { %s969_s24 = scalar_lea.vmem %s2290_s6, %s1862_s17 }
  0x2d   : >> { %v543_v11 = vmul.f32 %v1758_v8, %v542_v10 }
  0x2e   : >> { %635 = vmatpush.bf16.msra.mxu1 %v1470_v27 }
  0x2f   : >> { %v544_v12 = vadd.f32 %v1758_v8, %v543_v11 }
  0x31   : >> { %v2031_v13 = vsel %vm545_vm2, %v1758_v8, %v544_v12 }
  0x32   : >> { %636 = vmatpush.bf16.msra.mxu1 %v1462_v30 }
  0x36   : >> { %646 = vmatpush.bf16.msrb.mxu1 %v1490_v33 }
  0x3a   : >> { %647 = vmatpush.bf16.msrb.mxu1 %v1482_v37 }
  0x3e   : >> { %648 = vmatpush.bf16.msrb.mxu1 %v1474_v42 }
  0x42   : >> { %649 = vmatpush.bf16.msrb.mxu1 %v1466_v45 }
  0x96   : >> { %v539_v14 = vpop.xlane.xlu0 %538 }
  0x97   : >> { %v547_v15 = vmul.f32 %v2031_v13, %v539_v14 }
  0x99   : >> { %v548_v16 = vsub.f32 %v1858_v5, %v547_v15 }
  0x9b   : >> { %v549_v17 = vmul.f32 %v548_v16, %v548_v16 }
  0x9d   : >> { %v550_v18 = vsel %vm536_vm1, %v549_v17, 0.0 }
  0x9e   : >> { %551 = vadd.xlane.f32.xlu0 %v550_v18 }
 0x111   : >> { %v552_v36 = vpop.xlane.xlu0 %551 }
 0x112   : >> { %v553_v38 = vmul.f32 %v552_v36, %v2031_v13 }
 0x114   : >> { %v554_v41 = vadd.f32 1e-05, %v553_v38 }
 0x116   : >> { %1759 = vrsqrt.f32 %v554_v41  ;;  %vm561_vm4 = vweird.f32 %v554_v41 }
 0x11c   : >> { %v1760_v46 = vpop.eup %1759 }
 0x11d   : >> { %v556_v47 = vmul.f32 %v1760_v46, %v554_v41  ;;  %vm562_vm3 = vweird.f32 %v1760_v46 }
 0x11e   : >> { %vm563_vm5 = vmor %vm561_vm4, %vm562_vm3 }
 0x11f   : >> { %v557_v48 = vmul.f32 %v1760_v46, %v556_v47 }
 0x121   : >> { %v558_v49 = vmul.f32 0.5, %v557_v48 }
 0x123   : >> { %v559_v50 = vsub.f32 1.5, %v558_v49 }
 0x125   : >> { %v560_v51 = vmul.f32 %v1760_v46, %v559_v50 }
 0x127   : >> { %v564_v53 = vsel %vm563_vm5, %v1760_v46, %v560_v51 }
 0x128   : >> { %v565_v54 = vmul.f32 %v564_v53, %v548_v16 }
 0x12a   : >> { %v569_v56 = vmul.f32 %v1751_v52, %v565_v54 }
 0x12c   : >> { %v573_v57 = vadd.f32 %v1752_v55, %v569_v56 }
 0x12e   : >> { %v574_v58 = vpack.c.bf16 %v573_v57, %v573_v57 }
 0x130   : >> { %1491 = vmatmul.msk.bf16.vlgmr.msra.gmra.mxu1 %vm536_vm1, %v574_v58 }
 0x140   : >> { %1492 = vmatmul.msk.bf16.vlgmr.msrb.gmra.mxu1 %vm536_vm1, %v574_v58 }
 0x1ad   : >> { %v638_v59 = vpop.f32.mrf.mxu1 }
 0x1ae   : >> { %v655_v60 = vpack.c.bf16 %v638_v59, %v638_v59 }
 0x1b0   : >> { %v658_v61 = vunpack.c.l.b16 %v655_v60 }
 0x1b2   : >> { %v2081_v62 = vpack.c.b16 %v658_v61, %v658_v61 }
 0x1b4   : >> { %717 = vrot.lane.b32.xlu0 %v2081_v62, %s1866_s30  ;;  %660 = vrot.lane.b32.xlu1 %v2081_v62, %s1867_s20  ;;  %s1652_s20 = sshll.u32 %s1862_s17, 5 }
 0x1b5   : >> { %v640_v63 = vpop.f32.mrf.mxu1 }
 0x1bd   : >> { %v651_v0 = vpop.f32.mrf.mxu1 }
 0x1be   : >> { %v656_v1 = vpack.c.bf16 %v651_v0, %v651_v0 }
 0x1c0   : >> { %v702_v2 = vsel %vm700_vm6, %v656_v1, 0  ;;  %v755_v14 = vunpack.c.l.b16 %v656_v1 }
 0x1c1   : >> { %711 = vmatpush.bf16.msra.mxu3 %v702_v2 }
 0x1c2   : >> { %v2090_v15 = vpack.c.b16 %v755_v14, %v755_v14 }
 0x1c5   : >> { %v653_v3 = vpop.f32.mrf.mxu1 }
 0x226   : >> { %v661_v6 = vpop.permute.xlu1 %660  ;;  %v718_v29 = vpop.permute.xlu0 %717 }
 0x227   : >> { %v667_v7 = vsel %vm662_vm7, %v661_v6, 0 }
 0x228   : >> { %676 = vmatpush.bf16.xpose.msra.mxu2 %v667_v7 }
 0x22f   : >> { %1493 = vmatmul.msk.bf16.vlgmr.msra.gmra.mxu2 %vm662_vm7, %v655_v60 }
 0x2b2   : >> { %v678_v8 = vpop.f32.mrf.mxu2 }
 0x2b3   : >> { %v682_v9 = vmul.f32 0.25, %v678_v8 }
 0x2b5   : >> { %v683_v10 = vadd.f32 %v682_v9, %v2013_v4 }
 0x2b7   : >> { %v685_v11 = vsel %vm684_vm8, %v683_v10, -inf }
 0x2b8   : >> { %686 = vmax.xlane.f32.xlu1 %v685_v11 }
 0x2ba   : >> { %v680_v12 = vpop.f32.mrf.mxu2 }
 0x2d1   : >> { %757 = vrot.lane.b32.xlu1 %v2090_v15, %s1866_s30  ;;  %s923_s30 = scalar_lea.vmem %s2289_s5, %s1862_s17 }
 0x2d9   : >> { %836 = vrot.lane.b32.xlu1 %v2081_v62, %s1868_s26 }
 0x2e1   : >> { %778 = vrot.lane.b32.xlu1 %v2081_v62, %s1869_s28 }
 0x32b   : >> { %v687_v16 = vpop.xlane.xlu1 %686 }
 0x32c   : >> { %v688_v17 = vsub.f32 %v683_v10, %v687_v16 }
 0x32e   : >> { %v689_v18 = vmul.f32 1.442695, %v688_v17 }
 0x330   : >> { %1761 = vpow2.f32 %v689_v18 }
 0x336   : >> { %v1762_v19 = vpop.eup %1761 }
 0x337   : >> { %v691_v20 = vsel %vm684_vm8, %v1762_v19, 0.0 }
 0x338   : >> { %692 = vadd.xlane.f32.xlu2 %v691_v20 }
 0x343   : >> { %v758_v25 = vpop.permute.xlu1 %757 }
 0x344   : >> { %v763_v28 = vsel %vm700_vm6, %v758_v25, 0 }
 0x34b   : >> { %v837_v48 = vpop.permute.xlu1 %836 }
 0x350   : >> { %719 = vrot.lane.b32.xlu2 %v2081_v62, %s1870_s29 }
 0x353   : >> { %v779_v51 = vpop.permute.xlu1 %778 }
 0x3ab   : >> { %v693_v21 = vpop.xlane.xlu2 %692 }
 0x3ac   : >> { %1763 = vrcp.f32 %v693_v21 }
 0x3b2   : >> { %v1764_v22 = vpop.eup %1763 }
 0x3b3   : >> { %v720_v23 = vpop.permute.xlu2 %719  ;;  %v695_v24 = vmul.f32 %v1764_v22, %v1762_v19 }
 0x3b4   : >> { %v725_v26 = vsel %vm662_vm7, %v720_v23, 0 }
 0x3b5   : >> { %734 = vmatpush.bf16.xpose.msrb.mxu3 %v725_v26  ;;  %v696_v27 = vpack.c.bf16 %v695_v24, %v695_v24 }
 0x3b7   : >> { %1494 = vmatmul.msk.bf16.vlgmr.msra.gmra.mxu3 %vm684_vm8, %v696_v27 }
 0x3bd   : >> { %772 = vmatpush.bf16.msra.mxu3 %v763_v28 }
 0x3c7   : >> { %1495 = vmatmul.msk.bf16.vlgmr.msrb.gmra.mxu3 %vm662_vm7, %v718_v29 }
 0x43a   : >> { %v2104_v30 = vpop.f32.mrf.mxu3 }
 0x442   : >> { %v715_v31 = vpop.f32.mrf.mxu3 }
 0x44a   : >> { %v736_v32 = vpop.f32.mrf.mxu3 }
 0x44b   : >> { %v740_v33 = vmul.f32 0.25, %v736_v32 }
 0x44d   : >> { %v741_v34 = vadd.f32 %v740_v33, %v2013_v4 }
 0x44f   : >> { %v742_v35 = vsel %vm684_vm8, %v741_v34, -inf }
 0x450   : >> { %743 = vmax.xlane.f32.xlu2 %v742_v35 }
 0x452   : >> { %v738_v36 = vpop.f32.mrf.mxu3 }
 0x468   : >> { %838 = vrot.lane.b32.xlu2 %v2081_v62, %s1871_s21 }
 0x4c3   : >> { %v744_v37 = vpop.xlane.xlu2 %743 }
 0x4c4   : >> { %v745_v38 = vsub.f32 %v741_v34, %v744_v37 }
 0x4c6   : >> { %v746_v39 = vmul.f32 1.442695, %v745_v38 }
 0x4c8   : >> { %1765 = vpow2.f32 %v746_v39 }
 0x4cb   : >> { %v839_v40 = vpop.permute.xlu2 %838 }
 0x4cc   : >> { %v844_v41 = vsel %vm662_vm7, %v839_v40, 0 }
 0x4cd   : >> { %853 = vmatpush.bf16.xpose.msrb.mxu3 %v844_v41  ;;  %v1753_v41 = vld [vmem:[%s923_s30] ss:$0 sm:$0xff] }
 0x4ce   : >> { %v1766_v42 = vpop.eup %1765 }
 0x4cf   : >> { %v748_v43 = vsel %vm684_vm8, %v1766_v42, 0.0 }
 0x4d0   : >> { %749 = vadd.xlane.f32.xlu0 %v748_v43 }
 0x4e4   : >> { %780 = vrot.lane.b32.xlu0 %v2081_v62, %s1872_s27 }
 0x543   : >> { %v750_v44 = vpop.xlane.xlu0 %749 }
 0x544   : >> { %1767 = vrcp.f32 %v750_v44 }
 0x54a   : >> { %v1768_v45 = vpop.eup %1767 }
 0x54b   : >> { %v752_v46 = vmul.f32 %v1768_v45, %v1766_v42 }
 0x54d   : >> { %v753_v47 = vpack.c.bf16 %v752_v46, %v752_v46 }
 0x54f   : >> { %1496 = vmatmul.msk.bf16.vlgmr.msra.gmra.mxu3 %vm684_vm8, %v753_v47 }
 0x556   : >> { %v781_v49 = vpop.permute.xlu0 %780 }
 0x557   : >> { %v786_v50 = vsel %vm662_vm7, %v781_v49, 0 }
 0x558   : >> { %795 = vmatpush.bf16.xpose.msra.mxu0 %v786_v50 }
 0x55f   : >> { %1497 = vmatmul.msk.bf16.vlgmr.msra.gmra.mxu0 %vm662_vm7, %v779_v51  ;;  %1499 = vmatmul.msk.bf16.vlgmr.msrb.gmra.mxu3 %vm662_vm7, %v837_v48 }
 0x5d2   : >> { %v774_v52 = vpop.f32.mrf.mxu3 }
 0x5da   : >> { %v776_v53 = vpop.f32.mrf.mxu3 }
 0x5dc   : >> { %v797_v54 = vpop.f32.mrf.mxu0 }
 0x5dd   : >> { %v801_v55 = vmul.f32 0.25, %v797_v54 }
 0x5df   : >> { %v802_v56 = vadd.f32 %v801_v55, %v2013_v4 }
 0x5e1   : >> { %v803_v57 = vsel %vm684_vm8, %v802_v56, -inf }
 0x5e2   : >> { %804 = vmax.xlane.f32.xlu2 %v803_v57  ;;  %v855_v58 = vpop.f32.mrf.mxu3 }
 0x5e3   : >> { %v859_v59 = vmul.f32 0.25, %v855_v58 }
 0x5e4   : >> { %v799_v60 = vpop.f32.mrf.mxu0 }
 0x5e5   : >> { %v860_v61 = vadd.f32 %v859_v59, %v2013_v4 }
 0x5e7   : >> { %v861_v62 = vsel %vm684_vm8, %v860_v61, -inf }
 0x5e8   : >> { %862 = vmax.xlane.f32.xlu1 %v861_v62 }
 0x5ea   : >> { %v857_v63 = vpop.f32.mrf.mxu3 }
 0x5fa   : >> { %873 = vrot.lane.b32.xlu2 %v2090_v15, %s1868_s26 }
 0x655   : >> { %v805_v0 = vpop.xlane.xlu2 %804 }
 0x656   : >> { %v806_v1 = vsub.f32 %v802_v56, %v805_v0 }
 0x658   : >> { %v807_v2 = vmul.f32 1.442695, %v806_v1 }
 0x65a   : >> { %1769 = vpow2.f32 %v807_v2 }
 0x65b   : >> { %v863_v3 = vpop.xlane.xlu1 %862 }
 0x65c   : >> { %v864_v6 = vsub.f32 %v860_v61, %v863_v3 }
 0x65d   : >> { %v874_v7 = vpop.permute.xlu2 %873 }
 0x65e   : >> { %v865_v8 = vmul.f32 1.442695, %v864_v6  ;;  %v879_v9 = vsel %vm700_vm6, %v874_v7, 0 }
 0x65f   : >> { %888 = vmatpush.bf16.msrb.mxu2 %v879_v9 }
 0x660   : >> { %v1770_v10 = vpop.eup %1769  ;;  %1771 = vpow2.f32 %v865_v8 }
 0x661   : >> { %v809_v11 = vsel %vm684_vm8, %v1770_v10, 0.0 }
 0x662   : >> { %810 = vadd.xlane.f32.xlu1 %v809_v11 }
 0x666   : >> { %v1772_v12 = vpop.eup %1771 }
 0x667   : >> { %v867_v14 = vsel %vm684_vm8, %v1772_v12, 0.0 }
 0x668   : >> { %868 = vadd.xlane.f32.xlu0 %v867_v14 }
 0x67b   : >> { %895 = vrot.lane.b32.xlu1 %v774_v52, %s1871_s21  ;;  %s914_s21 = scalar_lea.vmem %s2288_s4, %s1652_s20  ;;  %s971_s20 = scalar_lea.vmem %s2291_s7, %s1862_s17 }
 0x67c   : >> { %815 = vrot.lane.b32.xlu0 %v2090_v15, %s1869_s28  ;;  %v1656_v29 = vld [vmem:[%s914_s21 + $0x18] sm:$0xff]  ;;  %v1655_v31 = vld [vmem:[%s914_s21 + $0x10] sm:$0xff]  ;;  %v1654_v32 = vld [vmem:[%s914_s21 + $0x8] sm:$0xff] }
 0x67d   : >> { %959 = vmatpush.bf16.msrb.mxu0 %v1656_v29  ;;  %v1653_v33 = vld [vmem:[%s914_s21] sm:$0xff]  ;;  %s1005_s21 = scalar_lea.vmem %s2292_s8, %s1643_s18  ;;  %s1666_s18 = sshll.u32 %s1862_s17, 7 }
 0x67e   : >> { %v1665_v51 = vld [vmem:[%s1005_s21 + $0x34] sm:$0xf0]  ;;  %v1664_v52 = vld [vmem:[%s1005_s21 + $0x34] sm:$0xf]  ;;  %v1550_v54 = vld [vmem:[%s1005_s21 + $0x38] sm:$0xf0]  ;;  %s2175_s23 = scalar_lea.vmem %s2294_s10, %s1666_s18 }
 0x67f   : >> { %v1553_v55 = vor.u32 %v1664_v52, %v1550_v54  ;;  %v1540_v56 = vld [vmem:[%s1005_s21 + $0x20] sm:$0xf]  ;;  %v1663_v57 = vld [vmem:[%s1005_s21 + $0x24] sm:$0xf0]  ;;  %v1662_v58 = vld [vmem:[%s1005_s21 + $0x24] sm:$0xf] }
 0x680   : >> { %v1541_v59 = vor.u32 %v1663_v57, %v1540_v56  ;;  %v1542_v60 = vld [vmem:[%s1005_s21 + $0x28] sm:$0xf0]  ;;  %v1532_v62 = vld [vmem:[%s1005_s21 + $0x10] sm:$0xf]  ;;  %v1661_v63 = vld [vmem:[%s1005_s21 + $0x14] sm:$0xf0] }
 0x681   : >> { %960 = vmatpush.bf16.msrb.mxu0 %v1655_v31  ;;  %1082 = vmatpush.bf16.msra.mxu3 %v1553_v55  ;;  %v1545_v61 = vor.u32 %v1662_v58, %v1542_v60  ;;  %v1660_v0 = vld [vmem:[%s1005_s21 + $0x14] sm:$0xf]  ;;  %v1533_v1 = vor.u32 %v1661_v63, %v1532_v62  ;;  %v1534_v2 = vld [vmem:[%s1005_s21 + $0x18] sm:$0xf0]  ;;  %v1524_v6 = vld [vmem:[%s1005_s21] sm:$0xf] }
 0x682   : >> { %v1537_v3 = vor.u32 %v1660_v0, %v1534_v2  ;;  %v1659_v7 = vld [vmem:[%s1005_s21 + $0x4] sm:$0xf0]  ;;  %v1658_v8 = vld [vmem:[%s1005_s21 + $0x4] sm:$0xf]  ;;  %v1682_v14 = vld [vmem:[%s2175_s23 + $0x78] sm:$0xff] }
 0x683   : >> { %v1525_v9 = vor.u32 %v1659_v7, %v1524_v6  ;;  %v1669_v31 = vld [vmem:[%s2175_s23 + $0x10] sm:$0xff] }
 0x685   : >> { %961 = vmatpush.bf16.msrb.mxu0 %v1654_v32  ;;  %1083 = vmatpush.bf16.msra.mxu3 %v1545_v61 }
 0x689   : >> { %962 = vmatpush.bf16.msrb.mxu0 %v1653_v33  ;;  %1084 = vmatpush.bf16.msra.mxu3 %v1537_v3 }
 0x68d   : >> { %1244 = vmatpush.bf16.msra.mxu0 %v1682_v14 }
 0x6d5   : >> { %v811_v17 = vpop.xlane.xlu1 %810 }
 0x6db   : >> { %v869_v16 = vpop.xlane.xlu0 %868 }
 0x6dc   : >> { %1773 = vrcp.f32 %v869_v16 }
 0x6dd   : >> { %1775 = vrcp.f32 %v811_v17 }
 0x6e2   : >> { %v1774_v18 = vpop.eup %1773 }
 0x6e3   : >> { %v871_v19 = vmul.f32 %v1774_v18, %v1772_v12  ;;  %v1776_v21 = vpop.eup %1775  ;;  %v1674_v12 = vld [vmem:[%s2175_s23 + $0x38] sm:$0xff]  ;;  %v1673_v18 = vld [vmem:[%s2175_s23 + $0x30] sm:$0xff] }
 0x6e4   : >> { %v813_v22 = vmul.f32 %v1776_v21, %v1770_v10  ;;  %v1526_v10 = vld [vmem:[%s1005_s21 + $0x8] sm:$0xf0]  ;;  %1231 = vmatpush.bf16.msra.mxu2 %v1674_v12 }
 0x6e5   : >> { %v872_v20 = vpack.c.bf16 %v871_v19, %v871_v19  ;;  %v1529_v11 = vor.u32 %v1658_v8, %v1526_v10  ;;  %v1681_v19 = vld [vmem:[%s2175_s23 + $0x70] sm:$0xff]  ;;  %v1672_v21 = vld [vmem:[%s2175_s23 + $0x28] sm:$0xff] }
 0x6e6   : >> { %v814_v25 = vpack.c.bf16 %v813_v22, %v813_v22  ;;  %1245 = vmatpush.bf16.msra.mxu0 %v1681_v19  ;;  %v1680_v22 = vld [vmem:[%s2175_s23 + $0x68] sm:$0xff] }
 0x6e7   : >> { %1500 = vmatmul.msk.bf16.vlgmr.msrb.gmra.mxu2 %vm684_vm8, %v872_v20  ;;  %1085 = vmatpush.bf16.msra.mxu3 %v1529_v11 }
 0x6e8   : >> { %1232 = vmatpush.bf16.msra.mxu2 %v1673_v18 }
 0x6ea   : >> { %1246 = vmatpush.bf16.msra.mxu0 %v1680_v22 }
 0x6ec   : >> { %1233 = vmatpush.bf16.msra.mxu2 %v1672_v21 }
 0x6ed   : >> { %v896_v34 = vpop.permute.xlu1 %895 }
 0x6ee   : >> { %v816_v23 = vpop.permute.xlu0 %815  ;;  %v906_v35 = vsel %vm662_vm7, %v2104_v30, %v896_v34  ;;  %v1754_v34 = vld [vmem:[%s969_s24] ss:$0 sm:$0xff] }
 0x6ef   : >> { %v821_v24 = vsel %vm700_vm6, %v816_v23, 0  ;;  %v1671_v23 = vld [vmem:[%s2175_s23 + $0x20] sm:$0xff] }
 0x6f0   : >> { %830 = vmatpush.bf16.msra.mxu1 %v821_v24  ;;  %v1679_v24 = vld [vmem:[%s2175_s23 + $0x60] sm:$0xff]  ;;  %1234 = vmatpush.bf16.msra.mxu2 %v1671_v23 }
 0x6f1   : >> { %1247 = vmatpush.bf16.msra.mxu0 %v1679_v24 }
 0x6f3   : >> { %1498 = vmatmul.msk.bf16.vlgmr.msra.gmra.mxu1 %vm684_vm8, %v814_v25 }
 0x76a   : >> { %v890_v15 = vpop.f32.mrf.mxu2 }
 0x76b   : >> { %903 = vrot.lane.b32.xlu2 %v890_v15, %s1870_s29  ;;  %s1130_s29 = scalar_lea.vmem %s2295_s11, %s1862_s17 }
 0x76c   : >> { %v1756_v58 = vld [vmem:[%s1130_s29] ss:$0 sm:$0xff] }
 0x770   : >> { %v832_v26 = vpop.f32.mrf.mxu1 }
 0x771   : >> { %899 = vrot.lane.b32.xlu0 %v832_v26, %s1872_s27  ;;  %v1670_v26 = vld [vmem:[%s2175_s23 + $0x18] sm:$0xff] }
 0x772   : >> { %v892_v27 = vpop.f32.mrf.mxu2  ;;  %1235 = vmatpush.bf16.msra.mxu2 %v1670_v26 }
 0x773   : >> { %v1678_v27 = vld [vmem:[%s2175_s23 + $0x58] sm:$0xff] }
 0x774   : >> { %1248 = vmatpush.bf16.msra.mxu0 %v1678_v27 }
 0x776   : >> { %1236 = vmatpush.bf16.msra.mxu2 %v1669_v31 }
 0x778   : >> { %v834_v28 = vpop.f32.mrf.mxu1 }
 0x7c5   : >> { %v904_v37 = vpop.permute.xlu2 %903 }
 0x7e3   : >> { %v900_v36 = vpop.permute.xlu0 %899 }
 0x7e4   : >> { %v908_v38 = vsel %vm907_vm9, %v906_v35, %v900_v36 }
 0x7e5   : >> { %v910_v39 = vsel %vm909_vm10, %v908_v38, %v904_v37  ;;  %v1755_v37 = vld [vmem:[%s971_s20] ss:$0 sm:$0xff]  ;;  %s1521_s20 = sshll.u32 %s1862_s17, 1  ;;  %s530_s17 = sadd.s32 1, %s1862_s17  }
 0x7e6   : >> { %v911_v40 = vpack.c.bf16 %v910_v39, %v910_v39  ;;  %s1015_s26 = scalar_lea.vmem %s2293_s9, %s1521_s20  ;;  %p527_p11 = scmp.ge.s32.totalorder %s530_s17, 6  }
 0x7e7   : > { %v1685_v10 = vld [vmem:[%s2298_s14 + $0x10] sm:$0xff] (%p527_p11)  ;;  %v1684_v4 = vld [vmem:[%s2298_s14 + $0x8] sm:$0xff] (%p527_p11)  ;;  %v1683_v11 = vld [vmem:[%s2298_s14] sm:$0xff] (%p527_p11)  ;;  %s1640_s28 = sshll.u32 (%p527_p11), %s1979_s25, 3  ;;  %s2323_s20 = scalar_lea.vmem (%p527_p11), [#allocation2], %s2010_s19 }
 0x7e8   : >> { %1519 = vmatmul.msk.bf16.vlgmr.msrb.gmra.mxu0 %vm536_vm1, %v911_v40  ;;  %v1779_v23 = vld [vmem:[%s2296_s12] ss:$0 sm:$0xff] (%p527_p11)  ;;  %s1363_s17 = scalar_lea.hbm (%p527_p11), %s2300_s16, %s1640_s28  ;;  %s1365_s27 = sshll.u32 (%p527_p11), %s2323_s20, 4  ;;  %s1366_s27 = int_to_ptr.vmem [resolvable:$true] %s1365_s27 }
 0x7e9   : > { %s1367_s30 = sshll.u32 (%p527_p11), %s1363_s17, 4  ;;  %s1804_s24 = scalar_lea.hbm (%p527_p11), %s2300_s16, 16  ;;  %s1368_s30 = int_to_ptr.hbm [resolvable:$true] %s1367_s30 }
 0x7ea   : > { %s1798_s25 = sshra.s32 (%p527_p11), %s1368_s30, 4  ;;  %s1799_s25 = int_to_ptr.hbm [resolvable:$true] %s1798_s25 }
 0x7eb   : > { %s1800_s2 = scalar_lea.hbm (%p527_p11), %s1799_s25, 8  ;;  %p1805_p1 = scmp.lt.s32.totalorder (%p527_p11), %s1799_s25, %s2300_s16 }
 0x7ec   : > { %p1801_p12 = scmp.ne.s32.totalorder (%p527_p11), %s1799_s25, %s1800_s2  ;;  %p1806_p2 = scmp.lt.s32.totalorder (%p527_p11), %s1804_s24, %s1800_s2 }
 0x7ee   : > { %p1802_p13 = pnand (%p527_p11), %p1801_p12, %p1996_p5  ;;  %p1807_p3 = por (%p527_p11), %p1806_p2, %p1805_p1 }
 0x7f0   : > { %p1803_p0 = pneg (%p527_p11), %p1802_p13 }
 0x7f2   : > { %p1808_p4 = pnand (%p527_p11), %p1807_p3, %p1803_p0 }
 0x865   : >> { %v964_v42 = vpop.f32.mrf.mxu0 }
 0x866   : >> { %v965_v43 = vadd.f32 %v1753_v41, %v964_v42  ;;  %v1668_v41 = vld [vmem:[%s2175_s23 + $0x8] sm:$0xff]  ;;  %v1677_v42 = vld [vmem:[%s2175_s23 + $0x50] sm:$0xff] }
 0x867   : >> { %1237 = vmatpush.bf16.msra.mxu2 %v1668_v41  ;;  %1249 = vmatpush.bf16.msra.mxu0 %v1677_v42 }
 0x868   : >> { %v2151_v44 = vadd.f32 %v1858_v5, %v965_v43  ;;  %v1548_v5 = vld [vmem:[%s1005_s21 + $0x30] sm:$0xf]  ;;  %v1667_v43 = vld [vmem:[%s2175_s23] sm:$0xff] }
 0x869   : >> { %v1549_v53 = vor.u32 %v1665_v51, %v1548_v5 }
 0x86a   : >> { %v973_v30 = vsel %vm536_vm1, %v2151_v44, 0.0 }
 0x86b   : >> { %974 = vadd.xlane.f32.xlu1 %v973_v30  ;;  %1069 = vmatpush.bf16.msrb.mxu1 %v1549_v53  ;;  %v1676_v30 = vld [vmem:[%s2175_s23 + $0x48] sm:$0xff] }
 0x86c   : >> { %1238 = vmatpush.bf16.msra.mxu2 %v1667_v43  ;;  %1250 = vmatpush.bf16.msra.mxu0 %v1676_v30 }
 0x86d   : >> { %v966_v45 = vpop.f32.mrf.mxu0 }
 0x86e   : >> { %v1675_v45 = vld [vmem:[%s2175_s23 + $0x40] sm:$0xff]  ;;  %s2325_s23 = sand.u32 (%p527_p11), 1, %s1846_s22  }
 0x86f   : >> { %1070 = vmatpush.bf16.msrb.mxu1 %v1541_v59  ;;  %s1353_s1 = scalar_lea.sflag (%p527_p11), [#allocation3], %s2325_s23 }
 0x870   : >> { %1251 = vmatpush.bf16.msra.mxu0 %v1675_v45 }
 0x873   : >> { %1071 = vmatpush.bf16.msrb.mxu1 %v1533_v1 }
 0x877   : >> { %1072 = vmatpush.bf16.msrb.mxu1 %v1525_v9  ;;  %v1686_v9 = vld [vmem:[%s2298_s14 + $0x18] sm:$0xff] (%p527_p11) }
 0x8de   : >> { %v975_v46 = vpop.xlane.xlu1 %974 }
 0x8df   : >> { %v976_v47 = vmul.f32 %v975_v46, %v2031_v13  ;;  %v1016_v46 = vld [vmem:[%s1015_s26] sm:$0x3]  ;;  %s2324_s26 = smov (%p527_p11), %s2323_s20 }
 0x8e0   : >> { %v1019_v5 = vperm.slane %v1016_v46, 1 }
 0x8e1   : >> { %v2157_v48 = vsub.f32 %v2151_v44, %v976_v47  ;;  %v1018_v47 = vperm.slane %v1016_v46, 0 }
 0x8e3   : >> { %v978_v49 = vmul.f32 %v2157_v48, %v2157_v48 }
 0x8e5   : >> { %v979_v50 = vsel %vm536_vm1, %v978_v49, 0.0 }
 0x8e6   : >> { %980 = vadd.xlane.f32.xlu0 %v979_v50 }
 0x959   : >> { %v981_v16 = vpop.xlane.xlu0 %980 }
 0x95a   : >> { %v982_v17 = vmul.f32 %v981_v16, %v2031_v13 }
 0x95c   : >> { %v983_v20 = vadd.f32 1e-05, %v982_v17 }
 0x95e   : >> { %1777 = vrsqrt.f32 %v983_v20  ;;  %vm990_vm12 = vweird.f32 %v983_v20 }
 0x964   : >> { %v1778_v25 = vpop.eup %1777 }
 0x965   : >> { %v985_v15 = vmul.f32 %v1778_v25, %v983_v20  ;;  %vm991_vm11 = vweird.f32 %v1778_v25 }
 0x966   : >> { %vm992_vm13 = vmor %vm990_vm12, %vm991_vm11 }
 0x967   : >> { %v986_v28 = vmul.f32 %v1778_v25, %v985_v15 }
 0x969   : >> { %v987_v29 = vmul.f32 0.5, %v986_v28  ;;  %v1781_v28 = vld [vmem:[%s2299_s15] ss:$0 sm:$0xff] (%p527_p11) }
 0x96b   : >> { %v988_v32 = vsub.f32 1.5, %v987_v29 }
 0x96d   : >> { %v989_v33 = vmul.f32 %v1778_v25, %v988_v32 }
 0x96f   : >> { %v993_v35 = vsel %vm992_vm13, %v1778_v25, %v989_v33  ;;  %v1780_v25 = vld [vmem:[%s2297_s13] ss:$0 sm:$0xff] (%p527_p11) }
 0x970   : >> { %v994_v36 = vmul.f32 %v993_v35, %v2157_v48 }
 0x972   : >> { %v998_v38 = vmul.f32 %v1754_v34, %v994_v36 }
 0x974   : >> { %v1002_v39 = vadd.f32 %v1755_v37, %v998_v38 }
 0x976   : >> { %v1003_v40 = vpack.c.bf16 %v1002_v39, %v1002_v39 }
 0x978   : >> { %1554 = vmatmul.msk.bf16.vlgmr.msrb.gmra.mxu1 %vm536_vm1, %v1003_v40  ;;  %1555 = vmatmul.msk.bf16.vlgmr.msra.gmra.mxu3 %vm536_vm1, %v1003_v40 }
 0x9f5   : >> { %v1074_v48 = vpop.f32.mrf.mxu1 }
 0x9f6   : >> { %v1075_v49 = vadd.f32 %v1074_v48, %v1018_v47 }
 0x9f8   : >> { %v1091_v50 = vmax.f32 %v1075_v49, 0.0 }
 0x9fa   : >> { %v1093_v51 = vpack.c.bf16 %v1091_v50, %v1091_v50 }
 0x9fb   : >> { %v1087_v52 = vpop.f32.mrf.mxu3 }
 0x9fc   : >> { %v1088_v53 = vadd.f32 %v1087_v52, %v1019_v5  ;;  %1239 = vmatmul.bf16.vlgmr.msra.gmra.mxu2 %v1093_v51 }
 0x9fd   : >> { %v1076_v54 = vpop.f32.mrf.mxu1 }
 0x9fe   : >> { %v1092_v55 = vmax.f32 %v1088_v53, 0.0 }
 0xa00   : >> { %v1094_v56 = vpack.c.bf16 %v1092_v55, %v1092_v55 }
 0xa02   : >> { %1252 = vmatmul.bf16.vlgmr.msra.gmra.mxu0 %v1094_v56 }
 0xa03   : >> { %v1089_v57 = vpop.f32.mrf.mxu3  ;;  %1342 = vmatpush.bf16.msra.mxu0 (%p527_p11), %v1686_v9 }
 0xa07   : > { %1343 = vmatpush.bf16.msra.mxu0 (%p527_p11), %v1685_v10 }
 0xa0b   : > { %1344 = vmatpush.bf16.msra.mxu0 (%p527_p11), %v1684_v4 }
 0xa0f   : > { %1345 = vmatpush.bf16.msra.mxu0 (%p527_p11), %v1683_v11 }
 0xa7f   : >> { %v1240_v59 = vpop.f32.mrf.mxu2  ;;  %v1253_v60 = vpop.f32.mrf.mxu0 }
 0xa80   : >> { %v1241_v61 = vadd.f32 %v1756_v58, %v1240_v59 }
 0xa82   : >> { %v1254_v62 = vadd.f32 %v1253_v60, %v1241_v61 }
 0xa83   : > { %529 = sbr.rel (!%p527_p11) target bundleno = 33 (0x21), region = 137 }
 0xa84   : >> { %v1257_v63 = vadd.f32 %v1254_v62, %v2151_v44  }
 0xa86   : >> { %v2322_v5 = vmov %v1257_v63  ;;  %v1261_v2 = vsel (%p527_p11), %vm536_vm1, %v1257_v63, 0.0 }
 0xa87   : >> { %v1242_v0 = vpop.f32.mrf.mxu2  ;;  %v1255_v1 = vpop.f32.mrf.mxu0  ;;  %1262 = vadd.xlane.f32.xlu0 (%p527_p11), %v1261_v2 }
 0xafa   : > { %v1263_v3 = vpop.xlane.xlu0 %1262 }
 0xafb   : > { %v1271_v6 = vmul.f32 %v1263_v3, %v2031_v13 }
 0xafd   : > { %v1272_v7 = vsub.f32 %v1257_v63, %v1271_v6 }
 0xaff   : > { %v1273_v8 = vmul.f32 %v1272_v7, %v1272_v7 }
 0xb01   : > { %v1274_v44 = vsel %vm536_vm1, %v1273_v8, 0.0 }
 0xb02   : > { %1275 = vadd.xlane.f32.xlu0 %v1274_v44 }
 0xb75   : > { %v1276_v12 = vpop.xlane.xlu0 %1275 }
 0xb76   : > { %v1277_v14 = vmul.f32 %v1276_v12, %v2031_v13 }
 0xb78   : > { %v1278_v16 = vadd.f32 1e-05, %v1277_v14 }
 0xb7a   : > { %1782 = vrsqrt.f32 %v1278_v16  ;;  %vm1285_vm15 = vweird.f32 %v1278_v16 }
 0xb80   : > { %v1783_v17 = vpop.eup %1782 }
 0xb81   : > { %v1280_v18 = vmul.f32 %v1783_v17, %v1278_v16  ;;  %vm1286_vm14 = vweird.f32 %v1783_v17 }
 0xb82   : > { %vm1287_vm0 = vmor %vm1285_vm15, %vm1286_vm14 }
 0xb83   : > { %v1281_v19 = vmul.f32 %v1783_v17, %v1280_v18 }
 0xb85   : > { %v1282_v20 = vmul.f32 0.5, %v1281_v19 }
 0xb87   : > { %v1283_v21 = vsub.f32 1.5, %v1282_v20 }
 0xb89   : > { %v1284_v22 = vmul.f32 %v1783_v17, %v1283_v21 }
 0xb8b   : > { %v1288_v24 = vsel %vm1287_vm0, %v1783_v17, %v1284_v22 }
 0xb8c   : > { %v1289_v13 = vmul.f32 %v1288_v24, %v1272_v7 }
 0xb8e   : > { %v1293_v15 = vmul.f32 %v1779_v23, %v1289_v13 }
 0xb90   : > { %v1297_v26 = vadd.f32 %v1780_v25, %v1293_v15 }
 0xb92   : > { %v1298_v27 = vpack.c.bf16 %v1297_v26, %v1297_v26 }
 0xb94   : > { %1638 = vmatmul.msk.bf16.vlgmr.msra.gmra.mxu0 %vm536_vm1, %v1298_v27 }
 0xc11   : > { %v1347_v29 = vpop.f32.mrf.mxu0 }
 0xc12   : > { %v1348_v31 = vadd.f32 %v1781_v28, %v1347_v29 }
 0xc14   : > { %1351 = vst [vmem:[%s2324_s26] sm:$0xff] %v1348_v31 }
 0xc15   : > { %1811 = shalt.err (!%p1808_p4)
}
 0xc16   : > { %1687 = dma.vmem_to_hbm [thread:$0]  (%p1996_p5), %s1366_s27, 128, %s1368_s30, %s1353_s1  }
 0xc19   : > { %v1349_v32 = vpop.f32.mrf.mxu0 }
 0xc1a PF: > { %s2326_s19 = sld [smem:[#allocation7_spill]] }
 0xc1b   : > { %s2327_s29 = sld [smem:[#allocation5_spill]] }
 0xc20   : > { %p1693_p7 = scmp.ge.s32.totalorder %s2326_s19, 2 }
 0xc21   : > { %s1379_s26 = sand.u32 1, %s2327_s29  }
 0xc22   : > { %p1690_p8 = pnand %p1693_p7, %p2000_p6  ;;  %s1380_s23 = scalar_lea.sflag [#allocation3], %s1379_s26 }
 0xc24   : > { %p1691_p9 = pneg %p1690_p8 }
 0xc26   : > { %1837 = dma.done.wait (%p1691_p9), %s1380_s23, 128  }
 0xc27   : > { %1839 = vsyncadd (%p1691_p9), %s1380_s23, 4294967168  ;;  %s2329_s24 = sld [smem:[#allocation8_spill]]  ;;  %s2332_s21 = smov %s1846_s22 }
 0xc28   : > { %s2330_s2 = sld [smem:[#allocation6_spill]] }
 0xc29   : > { %s2331_s23 = sld [smem:[#allocation9_spill]] }
 0xc2d   : > { %p26_p10 = scmp.ge.s32.totalorder %s2329_s24, 4  }
 0xc2e   : > { %s2333_s22 = smov %s2330_s2 }
 0xc2f   :  { %28 = sbr.rel (!%p26_p10) target bundleno = 7 (0x7), region = 148 }
 0xc34   :  { %1386 = vsyncpa [#allocation3], 1 }
 0xc35   :  { %1388 = vsyncpa [#allocation3 + $0x1], 1 }

</bundles_post_ra>
